<compile_context>
chip_gen: v6e
topology: v6e:2x2x1
jax: 0.10.0
libtpu: 0.0.40
codegen_flags: <defaults>
</compile_context>

<pallas_src>
import jax
import jax.numpy as jnp
from jax.experimental import pallas as pl
from jax.experimental.pallas import tpu as pltpu

EPS = 1e-5
LANE = 128


def _round_up(x, m):
    return (x + m - 1) // m * m


def _pick_rows(P, cap=1024):
    # Largest multiple-of-8 divisor of P that is <= cap and < P; fall back to P.
    for d in range(min(P - 1, cap), 7, -1):
        if P % d == 0 and d % 8 == 0:
            return d
    return P


# ---------------------------------------------------------------------------
# Pass 1: 3x3 "same" conv as 9 shifted MXU matmuls + per-tile BN partials.
# Grid: (N, H).  Each step produces one output row (W, Co) plus its channel
# sum and sum-of-squares (for the two-pass BatchNorm).
# ---------------------------------------------------------------------------
def _conv_stats_kernel(xtop_ref, xmid_ref, xbot_ref, w_ref,
                       y_ref, sum_ref, sq_ref):
    W = y_ref.shape[2]
    Co = y_ref.shape[3]
    acc = jnp.zeros((W, Co), jnp.float32)
    for ky, xr in enumerate((xtop_ref, xmid_ref, xbot_ref)):
        row = xr[0, 0]                                   # (W + 2, Ci) bf16
        for kx in range(3):
            acc = acc + jnp.dot(row[kx:kx + W, :], w_ref[3 * ky + kx],
                                preferred_element_type=jnp.float32)
    y_ref[0, 0] = acc.astype(y_ref.dtype)
    sum_ref[0, 0] = jnp.sum(acc, axis=0, keepdims=True)
    sq_ref[0, 0] = jnp.sum(acc * acc, axis=0, keepdims=True)


# ---------------------------------------------------------------------------
# Pass 2: folded BatchNorm affine + ReLU:  o = max(y * scale + shift, 0).
# Grid: tiles over the flattened N*H*W rows ("parallel").
# ---------------------------------------------------------------------------
def _bn_relu_kernel(y_ref, scale_ref, shift_ref, o_ref):
    o_ref[...] = jnp.maximum(
        y_ref[...] * scale_ref[...] + shift_ref[...], 0.0).astype(o_ref.dtype)


def conv3x3_bn_relu(x_nhwc, w_taps, gamma, beta, *, out_dtype):
    """x_nhwc: (N,H,W,Ci) channel-padded; w_taps: (9,Ci,Co); gamma/beta: (Co,)."""
    N, H, W, Ci = x_nhwc.shape
    Co = w_taps.shape[-1]

    x_pad = jnp.pad(x_nhwc.astype(jnp.bfloat16),
                    ((0, 0), (1, 1), (1, 1), (0, 0)))     # spatial "same" pad
    w_taps = w_taps.astype(jnp.bfloat16)

    flops = 2 * N * H * W * 9 * Ci * Co
    bytes_accessed = (3 * x_pad.size * 2 + w_taps.size * 2
                      + N * H * W * Co * 4 + 2 * N * H * Co * 4)

    y, psum, psq = pl.pallas_call(
        _conv_stats_kernel,
        out_shape=(
            jax.ShapeDtypeStruct((N, H, W, Co), jnp.float32),
            jax.ShapeDtypeStruct((N, H, 1, Co), jnp.float32),
            jax.ShapeDtypeStruct((N, H, 1, Co), jnp.float32),
        ),
        grid=(N, H),
        in_specs=[
            # Same padded array passed three times with +0/+1/+2 row offsets:
            # the halo for the 3x3 stencil with no HBM replication.
            pl.BlockSpec((1, 1, W + 2, Ci), lambda n, h: (n, h, 0, 0)),
            pl.BlockSpec((1, 1, W + 2, Ci), lambda n, h: (n, h + 1, 0, 0)),
            pl.BlockSpec((1, 1, W + 2, Ci), lambda n, h: (n, h + 2, 0, 0)),
            pl.BlockSpec((9, Ci, Co), lambda n, h: (0, 0, 0)),  # resident weights
        ],
        out_specs=(
            pl.BlockSpec((1, 1, W, Co), lambda n, h: (n, h, 0, 0)),
            pl.BlockSpec((1, 1, 1, Co), lambda n, h: (n, h, 0, 0)),
            pl.BlockSpec((1, 1, 1, Co), lambda n, h: (n, h, 0, 0)),
        ),
        compiler_params=pltpu.CompilerParams(
            dimension_semantics=("parallel", "parallel")),
        cost_estimate=pl.CostEstimate(
            flops=flops, transcendentals=0, bytes_accessed=bytes_accessed),
    )(x_pad, x_pad, x_pad, w_taps)

    # Combine tiny per-row partials (train-mode BN: biased variance), fold into
    # a single per-channel scale/shift (f32).
    P = N * H * W
    ssum = jnp.sum(psum, axis=(0, 1, 2))                  # (Co,)
    ssq = jnp.sum(psq, axis=(0, 1, 2))
    mean = ssum / P
    var = jnp.maximum(ssq / P - mean * mean, 0.0)
    scale = gamma.astype(jnp.float32) * jax.lax.rsqrt(var + EPS)
    shift = beta.astype(jnp.float32) - mean * scale

    # Pass 2: tiled, lane-dense normalize + affine + ReLU.
    TP = _pick_rows(P)
    out = pl.pallas_call(
        _bn_relu_kernel,
        out_shape=jax.ShapeDtypeStruct((P, Co), out_dtype),
        grid=(P // TP,),
        in_specs=[
            pl.BlockSpec((TP, Co), lambda i: (i, 0)),
            pl.BlockSpec((1, Co), lambda i: (0, 0)),
            pl.BlockSpec((1, Co), lambda i: (0, 0)),
        ],
        out_specs=pl.BlockSpec((TP, Co), lambda i: (i, 0)),
        compiler_params=pltpu.CompilerParams(
            dimension_semantics=("parallel",)),
    )(y.reshape(P, Co), scale.reshape(1, Co), shift.reshape(1, Co))
    return out.reshape(N, H, W, Co)


# ---------------------------------------------------------------------------
# Parameter plumbing
# ---------------------------------------------------------------------------
def _weight_to_taps(w_oihw, ci_p, co_p):
    # PyTorch (Cout, Cin, 3, 3) -> (9, Cin_p, Cout_p), tap-major, zero-padded.
    Co, Ci, KH, KW = w_oihw.shape
    w = jnp.transpose(w_oihw, (2, 3, 1, 0)).reshape(KH * KW, Ci, Co)
    return jnp.pad(w, ((0, 0), (0, ci_p - Ci), (0, co_p - Co)))


def _pad_vec(v, c_p):
    return jnp.pad(v.astype(jnp.float32), (0, c_p - v.shape[0]))


@jax.jit
def double_conv_forward(x_nchw, params):
    N, Cin, H, W = x_nchw.shape
    Cout = params["w1"].shape[0]
    ci_p = _round_up(Cin, LANE)
    co_p = _round_up(Cout, LANE)

    x = jnp.transpose(x_nchw, (0, 2, 3, 1))               # NHWC, once at boundary
    x = jnp.pad(x, ((0, 0), (0, 0), (0, 0), (0, ci_p - Cin)))

    # Block 1 (conv bias omitted: cancelled by train-mode BN mean subtraction).
    h = conv3x3_bn_relu(
        x, _weight_to_taps(params["w1"], ci_p, co_p),
        _pad_vec(params["g1"], co_p), _pad_vec(params["be1"], co_p),
        out_dtype=jnp.bfloat16)                           # stays NHWC / lane-padded

    # Block 2
    out = conv3x3_bn_relu(
        h, _weight_to_taps(params["w2"], co_p, co_p),
        _pad_vec(params["g2"], co_p), _pad_vec(params["be2"], co_p),
        out_dtype=jnp.float32)

    out = out[..., :Cout]                                 # drop channel padding
    return jnp.transpose(out, (0, 3, 1, 2))               # back to NCHW


# ---------------------------------------------------------------------------
# Pure-JAX reference (lax.conv, f32, with bias) for a correctness check.
# ---------------------------------------------------------------------------
def reference_forward(x, params):
    def conv(xc, w, b):
        y = jax.lax.conv_general_dilated(
            xc, w, window_strides=(1, 1), padding="SAME",
            dimension_numbers=("NCHW", "OIHW", "NCHW"))
        return y + b[None, :, None, None]

    def bn_relu(y, g, be):
        mean = jnp.mean(y, axis=(0, 2, 3), keepdims=True)
        var = jnp.mean(jnp.square(y - mean), axis=(0, 2, 3), keepdims=True)
        y = (y - mean) * jax.lax.rsqrt(var + EPS)
        y = y * g[None, :, None, None] + be[None, :, None, None]
        return jnp.maximum(y, 0.0)

    y = bn_relu(conv(x, params["w1"], params["b1"]), params["g1"], params["be1"])
    y = bn_relu(conv(y, params["w2"], params["b2"]), params["g2"], params["be2"])
    return y


if __name__ == "__main__":
    # DoubleConv(in_channels=4, out_channels=8) on a (2, 4, 16, 16) input.
    N, Cin, Cout, H, W = 2, 4, 8, 16, 16

    key = jax.random.PRNGKey(0)
    k = jax.random.split(key, 5)

    def bf16_round(a):  # bf16-representable test data => tight comparison
        return a.astype(jnp.bfloat16).astype(jnp.float32)

    params = {
        "w1": bf16_round(jax.random.normal(k[0], (Cout, Cin, 3, 3), jnp.float32) * 0.1),
        "b1": jax.random.normal(k[1], (Cout,), jnp.float32) * 0.1,
        "g1": jnp.ones((Cout,), jnp.float32),    # BatchNorm2d default weight
        "be1": jnp.zeros((Cout,), jnp.float32),  # BatchNorm2d default bias
        "w2": bf16_round(jax.random.normal(k[2], (Cout, Cout, 3, 3), jnp.float32) * 0.1),
        "b2": jax.random.normal(k[3], (Cout,), jnp.float32) * 0.1,
        "g2": jnp.ones((Cout,), jnp.float32),
        "be2": jnp.zeros((Cout,), jnp.float32),
    }
    x = bf16_round(jax.random.normal(k[4], (N, Cin, H, W), jnp.float32))

    out = jax.block_until_ready(double_conv_forward(x, params))
    ref = jax.block_until_ready(reference_forward(x, params))

    assert out.shape == (N, Cout, H, W), out.shape
    max_err = float(jnp.max(jnp.abs(out - ref)))
    assert jnp.allclose(out, ref, atol=3e-2, rtol=3e-2), max_err

    print("KERNEL_OK")
</pallas_src>

<mosaic_0001>
module attributes {stable_mosaic.version = 11 : i64} {
  func.func @_bn_relu_kernel(%arg0: i32, %arg1: memref<256x128xf32, #tpu.memory_space<vmem>>, %arg2: memref<1x128xf32, #tpu.memory_space<vmem>>, %arg3: memref<1x128xf32, #tpu.memory_space<vmem>>, %arg4: memref<256x128xbf16, #tpu.memory_space<vmem>>) attributes {dimension_semantics = [#tpu.dimension_semantics<parallel>], iteration_bounds = array<i64: 2>, scalar_prefetch = 0 : i64, scratch_operands = 0 : i64, tpu.core_type = #tpu.core_type<tc>, window_params = [{transform_indices = @transform_0, window_bounds = array<i64: 256, 128>}, {pipeline_mode = #tpu.pipeline_mode<synchronous>, transform_indices = @transform_1, window_bounds = array<i64: 1, 128>}, {pipeline_mode = #tpu.pipeline_mode<synchronous>, transform_indices = @transform_2, window_bounds = array<i64: 1, 128>}, {transform_indices = @transform_3, window_bounds = array<i64: 256, 128>}]} {
    %c0 = arith.constant 0 : index
    %c0_0 = arith.constant 0 : index
    %0 = vector.load %arg1[%c0, %c0_0] : memref<256x128xf32, #tpu.memory_space<vmem>>, vector<256x128xf32>
    %c0_1 = arith.constant 0 : index
    %c0_2 = arith.constant 0 : index
    %1 = vector.load %arg2[%c0_1, %c0_2] : memref<1x128xf32, #tpu.memory_space<vmem>>, vector<1x128xf32>
    %2 = vector.broadcast %1 : vector<1x128xf32> to vector<256x128xf32>
    %3 = arith.mulf %0, %2 : vector<256x128xf32>
    %c0_3 = arith.constant 0 : index
    %c0_4 = arith.constant 0 : index
    %4 = vector.load %arg3[%c0_3, %c0_4] : memref<1x128xf32, #tpu.memory_space<vmem>>, vector<1x128xf32>
    %5 = vector.broadcast %4 : vector<1x128xf32> to vector<256x128xf32>
    %6 = arith.addf %3, %5 : vector<256x128xf32>
    %cst = arith.constant 0.000000e+00 : f32
    %7 = vector.broadcast %cst : f32 to vector<256x128xf32>
    %8 = arith.maximumf %6, %7 : vector<256x128xf32>
    %9 = arith.truncf %8 : vector<256x128xf32> to vector<256x128xbf16>
    %c0_5 = arith.constant 0 : index
    %c0_6 = arith.constant 0 : index
    %10 = vector.load %arg4[%c0_5, %c0_6] : memref<256x128xbf16, #tpu.memory_space<vmem>>, vector<256x128xbf16>
    tpu.vector_store %arg4[%c0_5, %c0_6], %9 {strides = array<i32>} : memref<256x128xbf16, #tpu.memory_space<vmem>>, vector<256x128xbf16>,
    return
  }
  func.func @transform_0(%arg0: i32) -> (i32, i32) {
    %c0_i32 = arith.constant 0 : i32
    %c0_i32_0 = arith.constant 0 : i32
    return %arg0, %c0_i32 : i32, i32
  }
  func.func @transform_1(%arg0: i32) -> (i32, i32) {
    %c0_i32 = arith.constant 0 : i32
    %c0_i32_0 = arith.constant 0 : i32
    %c0_i32_1 = arith.constant 0 : i32
    return %c0_i32, %c0_i32_0 : i32, i32
  }
  func.func @transform_2(%arg0: i32) -> (i32, i32) {
    %c0_i32 = arith.constant 0 : i32
    %c0_i32_0 = arith.constant 0 : i32
    %c0_i32_1 = arith.constant 0 : i32
    return %c0_i32, %c0_i32_0 : i32, i32
  }
  func.func @transform_3(%arg0: i32) -> (i32, i32) {
    %c0_i32 = arith.constant 0 : i32
    %c0_i32_0 = arith.constant 0 : i32
    return %arg0, %c0_i32 : i32, i32
  }
}

module attributes {stable_mosaic.version = 11 : i64} {
  func.func @_conv_stats_kernel(%arg0: i32, %arg1: i32, %arg2: memref<1x1x18x128xbf16, #tpu.memory_space<vmem>>, %arg3: memref<1x1x18x128xbf16, #tpu.memory_space<vmem>>, %arg4: memref<1x1x18x128xbf16, #tpu.memory_space<vmem>>, %arg5: memref<9x128x128xbf16, #tpu.memory_space<vmem>>, %arg6: memref<1x1x16x128xf32, #tpu.memory_space<vmem>>, %arg7: memref<1x1x1x128xf32, #tpu.memory_space<vmem>>, %arg8: memref<1x1x1x128xf32, #tpu.memory_space<vmem>>) attributes {dimension_semantics = [#tpu.dimension_semantics<parallel>, #tpu.dimension_semantics<parallel>], iteration_bounds = array<i64: 2, 16>, scalar_prefetch = 0 : i64, scratch_operands = 0 : i64, tpu.core_type = #tpu.core_type<tc>, window_params = [{transform_indices = @transform_0, window_bounds = array<i64: 1, 1, 18, 128>}, {transform_indices = @transform_1, window_bounds = array<i64: 1, 1, 18, 128>}, {transform_indices = @transform_2, window_bounds = array<i64: 1, 1, 18, 128>}, {pipeline_mode = #tpu.pipeline_mode<synchronous>, transform_indices = @transform_3, window_bounds = array<i64: 9, 128, 128>}, {transform_indices = @transform_4, window_bounds = array<i64: 1, 1, 16, 128>}, {transform_indices = @transform_5, window_bounds = array<i64: 1, 1, 1, 128>}, {transform_indices = @transform_6, window_bounds = array<i64: 1, 1, 1, 128>}]} {
    %cst = arith.constant 0.000000e+00 : f32
    %0 = vector.broadcast %cst : f32 to vector<16x128xf32>
    %c0 = arith.constant 0 : index
    %c0_0 = arith.constant 0 : index
    %c0_1 = arith.constant 0 : index
    %c0_2 = arith.constant 0 : index
    %1 = vector.load %arg2[%c0, %c0_0, %c0_1, %c0_2] : memref<1x1x18x128xbf16, #tpu.memory_space<vmem>>, vector<1x1x18x128xbf16>
    %2 = vector.shape_cast %1 : vector<1x1x18x128xbf16> to vector<18x128xbf16>
    %3 = vector.extract_strided_slice %2 {offsets = [0, 0], sizes = [16, 128], strides = [1, 1]} : vector<18x128xbf16> to vector<16x128xbf16>
    %c0_3 = arith.constant 0 : index
    %c0_4 = arith.constant 0 : index
    %c0_5 = arith.constant 0 : index
    %4 = vector.load %arg5[%c0_3, %c0_4, %c0_5] : memref<9x128x128xbf16, #tpu.memory_space<vmem>>, vector<1x128x128xbf16>
    %5 = vector.shape_cast %4 : vector<1x128x128xbf16> to vector<128x128xbf16>
    %cst_6 = arith.constant dense<0.000000e+00> : vector<16x128xf32>
    %6 = tpu.matmul %3, %5, %cst_6 {dimension_numbers = #tpu.dot_dimension_numbers<[1], [0], [0], [1], [0, 0, 1, 1], [], []>} : vector<16x128xbf16>, vector<128x128xbf16>, vector<16x128xf32> -> vector<16x128xf32>
    %7 = arith.addf %0, %6 : vector<16x128xf32>
    %8 = vector.extract_strided_slice %2 {offsets = [1, 0], sizes = [16, 128], strides = [1, 1]} : vector<18x128xbf16> to vector<16x128xbf16>
    %c1 = arith.constant 1 : index
    %c0_7 = arith.constant 0 : index
    %c0_8 = arith.constant 0 : index
    %9 = vector.load %arg5[%c1, %c0_7, %c0_8] : memref<9x128x128xbf16, #tpu.memory_space<vmem>>, vector<1x128x128xbf16>
    %10 = vector.shape_cast %9 : vector<1x128x128xbf16> to vector<128x128xbf16>
    %cst_9 = arith.constant dense<0.000000e+00> : vector<16x128xf32>
    %11 = tpu.matmul %8, %10, %cst_9 {dimension_numbers = #tpu.dot_dimension_numbers<[1], [0], [0], [1], [0, 0, 1, 1], [], []>} : vector<16x128xbf16>, vector<128x128xbf16>, vector<16x128xf32> -> vector<16x128xf32>
    %12 = arith.addf %7, %11 : vector<16x128xf32>
    %13 = vector.extract_strided_slice %2 {offsets = [2, 0], sizes = [16, 128], strides = [1, 1]} : vector<18x128xbf16> to vector<16x128xbf16>
    %c2 = arith.constant 2 : index
    %c0_10 = arith.constant 0 : index
    %c0_11 = arith.constant 0 : index
    %14 = vector.load %arg5[%c2, %c0_10, %c0_11] : memref<9x128x128xbf16, #tpu.memory_space<vmem>>, vector<1x128x128xbf16>
    %15 = vector.shape_cast %14 : vector<1x128x128xbf16> to vector<128x128xbf16>
    %cst_12 = arith.constant dense<0.000000e+00> : vector<16x128xf32>
    %16 = tpu.matmul %13, %15, %cst_12 {dimension_numbers = #tpu.dot_dimension_numbers<[1], [0], [0], [1], [0, 0, 1, 1], [], []>} : vector<16x128xbf16>, vector<128x128xbf16>, vector<16x128xf32> -> vector<16x128xf32>
    %17 = arith.addf %12, %16 : vector<16x128xf32>
    %c0_13 = arith.constant 0 : index
    %c0_14 = arith.constant 0 : index
    %c0_15 = arith.constant 0 : index
    %c0_16 = arith.constant 0 : index
    %18 = vector.load %arg3[%c0_13, %c0_14, %c0_15, %c0_16] : memref<1x1x18x128xbf16, #tpu.memory_space<vmem>>, vector<1x1x18x128xbf16>
    %19 = vector.shape_cast %18 : vector<1x1x18x128xbf16> to vector<18x128xbf16>
    %20 = vector.extract_strided_slice %19 {offsets = [0, 0], sizes = [16, 128], strides = [1, 1]} : vector<18x128xbf16> to vector<16x128xbf16>
    %c3 = arith.constant 3 : index
    %c0_17 = arith.constant 0 : index
    %c0_18 = arith.constant 0 : index
    %21 = vector.load %arg5[%c3, %c0_17, %c0_18] : memref<9x128x128xbf16, #tpu.memory_space<vmem>>, vector<1x128x128xbf16>
    %22 = vector.shape_cast %21 : vector<1x128x128xbf16> to vector<128x128xbf16>
    %cst_19 = arith.constant dense<0.000000e+00> : vector<16x128xf32>
    %23 = tpu.matmul %20, %22, %cst_19 {dimension_numbers = #tpu.dot_dimension_numbers<[1], [0], [0], [1], [0, 0, 1, 1], [], []>} : vector<16x128xbf16>, vector<128x128xbf16>, vector<16x128xf32> -> vector<16x128xf32>
    %24 = arith.addf %17, %23 : vector<16x128xf32>
    %25 = vector.extract_strided_slice %19 {offsets = [1, 0], sizes = [16, 128], strides = [1, 1]} : vector<18x128xbf16> to vector<16x128xbf16>
    %c4 = arith.constant 4 : index
    %c0_20 = arith.constant 0 : index
    %c0_21 = arith.constant 0 : index
    %26 = vector.load %arg5[%c4, %c0_20, %c0_21] : memref<9x128x128xbf16, #tpu.memory_space<vmem>>, vector<1x128x128xbf16>
    %27 = vector.shape_cast %26 : vector<1x128x128xbf16> to vector<128x128xbf16>
    %cst_22 = arith.constant dense<0.000000e+00> : vector<16x128xf32>
    %28 = tpu.matmul %25, %27, %cst_22 {dimension_numbers = #tpu.dot_dimension_numbers<[1], [0], [0], [1], [0, 0, 1, 1], [], []>} : vector<16x128xbf16>, vector<128x128xbf16>, vector<16x128xf32> -> vector<16x128xf32>
    %29 = arith.addf %24, %28 : vector<16x128xf32>
    %30 = vector.extract_strided_slice %19 {offsets = [2, 0], sizes = [16, 128], strides = [1, 1]} : vector<18x128xbf16> to vector<16x128xbf16>
    %c5 = arith.constant 5 : index
    %c0_23 = arith.constant 0 : index
    %c0_24 = arith.constant 0 : index
    %31 = vector.load %arg5[%c5, %c0_23, %c0_24] : memref<9x128x128xbf16, #tpu.memory_space<vmem>>, vector<1x128x128xbf16>
    %32 = vector.shape_cast %31 : vector<1x128x128xbf16> to vector<128x128xbf16>
    %cst_25 = arith.constant dense<0.000000e+00> : vector<16x128xf32>
    %33 = tpu.matmul %30, %32, %cst_25 {dimension_numbers = #tpu.dot_dimension_numbers<[1], [0], [0], [1], [0, 0, 1, 1], [], []>} : vector<16x128xbf16>, vector<128x128xbf16>, vector<16x128xf32> -> vector<16x128xf32>
    %34 = arith.addf %29, %33 : vector<16x128xf32>
    %c0_26 = arith.constant 0 : index
    %c0_27 = arith.constant 0 : index
    %c0_28 = arith.constant 0 : index
    %c0_29 = arith.constant 0 : index
    %35 = vector.load %arg4[%c0_26, %c0_27, %c0_28, %c0_29] : memref<1x1x18x128xbf16, #tpu.memory_space<vmem>>, vector<1x1x18x128xbf16>
    %36 = vector.shape_cast %35 : vector<1x1x18x128xbf16> to vector<18x128xbf16>
    %37 = vector.extract_strided_slice %36 {offsets = [0, 0], sizes = [16, 128], strides = [1, 1]} : vector<18x128xbf16> to vector<16x128xbf16>
    %c6 = arith.constant 6 : index
    %c0_30 = arith.constant 0 : index
    %c0_31 = arith.constant 0 : index
    %38 = vector.load %arg5[%c6, %c0_30, %c0_31] : memref<9x128x128xbf16, #tpu.memory_space<vmem>>, vector<1x128x128xbf16>
    %39 = vector.shape_cast %38 : vector<1x128x128xbf16> to vector<128x128xbf16>
    %cst_32 = arith.constant dense<0.000000e+00> : vector<16x128xf32>
    %40 = tpu.matmul %37, %39, %cst_32 {dimension_numbers = #tpu.dot_dimension_numbers<[1], [0], [0], [1], [0, 0, 1, 1], [], []>} : vector<16x128xbf16>, vector<128x128xbf16>, vector<16x128xf32> -> vector<16x128xf32>
    %41 = arith.addf %34, %40 : vector<16x128xf32>
    %42 = vector.extract_strided_slice %36 {offsets = [1, 0], sizes = [16, 128], strides = [1, 1]} : vector<18x128xbf16> to vector<16x128xbf16>
    %c7 = arith.constant 7 : index
    %c0_33 = arith.constant 0 : index
    %c0_34 = arith.constant 0 : index
    %43 = vector.load %arg5[%c7, %c0_33, %c0_34] : memref<9x128x128xbf16, #tpu.memory_space<vmem>>, vector<1x128x128xbf16>
    %44 = vector.shape_cast %43 : vector<1x128x128xbf16> to vector<128x128xbf16>
    %cst_35 = arith.constant dense<0.000000e+00> : vector<16x128xf32>
    %45 = tpu.matmul %42, %44, %cst_35 {dimension_numbers = #tpu.dot_dimension_numbers<[1], [0], [0], [1], [0, 0, 1, 1], [], []>} : vector<16x128xbf16>, vector<128x128xbf16>, vector<16x128xf32> -> vector<16x128xf32>
    %46 = arith.addf %41, %45 : vector<16x128xf32>
    %47 = vector.extract_strided_slice %36 {offsets = [2, 0], sizes = [16, 128], strides = [1, 1]} : vector<18x128xbf16> to vector<16x128xbf16>
    %c8 = arith.constant 8 : index
    %c0_36 = arith.constant 0 : index
    %c0_37 = arith.constant 0 : index
    %48 = vector.load %arg5[%c8, %c0_36, %c0_37] : memref<9x128x128xbf16, #tpu.memory_space<vmem>>, vector<1x128x128xbf16>
    %49 = vector.shape_cast %48 : vector<1x128x128xbf16> to vector<128x128xbf16>
    %cst_38 = arith.constant dense<0.000000e+00> : vector<16x128xf32>
    %50 = tpu.matmul %47, %49, %cst_38 {dimension_numbers = #tpu.dot_dimension_numbers<[1], [0], [0], [1], [0, 0, 1, 1], [], []>} : vector<16x128xbf16>, vector<128x128xbf16>, vector<16x128xf32> -> vector<16x128xf32>
    %51 = arith.addf %46, %50 : vector<16x128xf32>
    %c0_39 = arith.constant 0 : index
    %c0_40 = arith.constant 0 : index
    %c0_41 = arith.constant 0 : index
    %c0_42 = arith.constant 0 : index
    %52 = vector.load %arg6[%c0_39, %c0_40, %c0_41, %c0_42] : memref<1x1x16x128xf32, #tpu.memory_space<vmem>>, vector<1x1x16x128xf32>
    %53 = vector.shape_cast %52 : vector<1x1x16x128xf32> to vector<16x128xf32>
    %54 = vector.shape_cast %51 : vector<16x128xf32> to vector<1x1x16x128xf32>
    tpu.vector_store %arg6[%c0_39, %c0_40, %c0_41, %c0_42], %54 {strides = array<i32>} : memref<1x1x16x128xf32, #tpu.memory_space<vmem>>, vector<1x1x16x128xf32>,
    %cst_43 = arith.constant dense<0.000000e+00> : vector<128xf32>
    %55 = vector.multi_reduction <add>, %51, %cst_43 [0] : vector<16x128xf32> to vector<128xf32>
    %56 = vector.shape_cast %55 : vector<128xf32> to vector<1x128xf32>
    %c0_44 = arith.constant 0 : index
    %c0_45 = arith.constant 0 : index
    %c0_46 = arith.constant 0 : index
    %c0_47 = arith.constant 0 : index
    %57 = vector.load %arg7[%c0_44, %c0_45, %c0_46, %c0_47] : memref<1x1x1x128xf32, #tpu.memory_space<vmem>>, vector<1x1x1x128xf32>
    %58 = vector.shape_cast %57 : vector<1x1x1x128xf32> to vector<1x128xf32>
    %59 = vector.shape_cast %56 : vector<1x128xf32> to vector<1x1x1x128xf32>
    tpu.vector_store %arg7[%c0_44, %c0_45, %c0_46, %c0_47], %59 {strides = array<i32>} : memref<1x1x1x128xf32, #tpu.memory_space<vmem>>, vector<1x1x1x128xf32>,
    %60 = arith.mulf %51, %51 : vector<16x128xf32>
    %cst_48 = arith.constant dense<0.000000e+00> : vector<128xf32>
    %61 = vector.multi_reduction <add>, %60, %cst_48 [0] : vector<16x128xf32> to vector<128xf32>
    %62 = vector.shape_cast %61 : vector<128xf32> to vector<1x128xf32>
    %c0_49 = arith.constant 0 : index
    %c0_50 = arith.constant 0 : index
    %c0_51 = arith.constant 0 : index
    %c0_52 = arith.constant 0 : index
    %63 = vector.load %arg8[%c0_49, %c0_50, %c0_51, %c0_52] : memref<1x1x1x128xf32, #tpu.memory_space<vmem>>, vector<1x1x1x128xf32>
    %64 = vector.shape_cast %63 : vector<1x1x1x128xf32> to vector<1x128xf32>
    %65 = vector.shape_cast %62 : vector<1x128xf32> to vector<1x1x1x128xf32>
    tpu.vector_store %arg8[%c0_49, %c0_50, %c0_51, %c0_52], %65 {strides = array<i32>} : memref<1x1x1x128xf32, #tpu.memory_space<vmem>>, vector<1x1x1x128xf32>,
    return
  }
  func.func @transform_0(%arg0: i32, %arg1: i32) -> (i32, i32, i32, i32) {
    %c0_i32 = arith.constant 0 : i32
    %c0_i32_0 = arith.constant 0 : i32
    %c0_i32_1 = arith.constant 0 : i32
    return %arg0, %arg1, %c0_i32, %c0_i32_0 : i32, i32, i32, i32
  }
  func.func @transform_1(%arg0: i32, %arg1: i32) -> (i32, i32, i32, i32) {
    %c1_i32 = arith.constant 1 : i32
    %0 = arith.addi %arg1, %c1_i32 : i32
    %c0_i32 = arith.constant 0 : i32
    %c0_i32_0 = arith.constant 0 : i32
    %c0_i32_1 = arith.constant 0 : i32
    return %arg0, %0, %c0_i32, %c0_i32_0 : i32, i32, i32, i32
  }
  func.func @transform_2(%arg0: i32, %arg1: i32) -> (i32, i32, i32, i32) {
    %c2_i32 = arith.constant 2 : i32
    %0 = arith.addi %arg1, %c2_i32 : i32
    %c0_i32 = arith.constant 0 : i32
    %c0_i32_0 = arith.constant 0 : i32
    %c0_i32_1 = arith.constant 0 : i32
    return %arg0, %0, %c0_i32, %c0_i32_0 : i32, i32, i32, i32
  }
  func.func @transform_3(%arg0: i32, %arg1: i32) -> (i32, i32, i32) {
    %c0_i32 = arith.constant 0 : i32
    %c0_i32_0 = arith.constant 0 : i32
    %c0_i32_1 = arith.constant 0 : i32
    %c0_i32_2 = arith.constant 0 : i32
    return %c0_i32, %c0_i32_0, %c0_i32_1 : i32, i32, i32
  }
  func.func @transform_4(%arg0: i32, %arg1: i32) -> (i32, i32, i32, i32) {
    %c0_i32 = arith.constant 0 : i32
    %c0_i32_0 = arith.constant 0 : i32
    %c0_i32_1 = arith.constant 0 : i32
    return %arg0, %arg1, %c0_i32, %c0_i32_0 : i32, i32, i32, i32
  }
  func.func @transform_5(%arg0: i32, %arg1: i32) -> (i32, i32, i32, i32) {
    %c0_i32 = arith.constant 0 : i32
    %c0_i32_0 = arith.constant 0 : i32
    %c0_i32_1 = arith.constant 0 : i32
    return %arg0, %arg1, %c0_i32, %c0_i32_0 : i32, i32, i32, i32
  }
  func.func @transform_6(%arg0: i32, %arg1: i32) -> (i32, i32, i32, i32) {
    %c0_i32 = arith.constant 0 : i32
    %c0_i32_0 = arith.constant 0 : i32
    %c0_i32_1 = arith.constant 0 : i32
    return %arg0, %arg1, %c0_i32, %c0_i32_0 : i32, i32, i32, i32
  }
}

module attributes {stable_mosaic.version = 11 : i64} {
  func.func @_bn_relu_kernel(%arg0: i32, %arg1: memref<256x128xf32, #tpu.memory_space<vmem>>, %arg2: memref<1x128xf32, #tpu.memory_space<vmem>>, %arg3: memref<1x128xf32, #tpu.memory_space<vmem>>, %arg4: memref<256x128xf32, #tpu.memory_space<vmem>>) attributes {dimension_semantics = [#tpu.dimension_semantics<parallel>], iteration_bounds = array<i64: 2>, scalar_prefetch = 0 : i64, scratch_operands = 0 : i64, tpu.core_type = #tpu.core_type<tc>, window_params = [{transform_indices = @transform_0, window_bounds = array<i64: 256, 128>}, {pipeline_mode = #tpu.pipeline_mode<synchronous>, transform_indices = @transform_1, window_bounds = array<i64: 1, 128>}, {pipeline_mode = #tpu.pipeline_mode<synchronous>, transform_indices = @transform_2, window_bounds = array<i64: 1, 128>}, {transform_indices = @transform_3, window_bounds = array<i64: 256, 128>}]} {
    %c0 = arith.constant 0 : index
    %c0_0 = arith.constant 0 : index
    %0 = vector.load %arg1[%c0, %c0_0] : memref<256x128xf32, #tpu.memory_space<vmem>>, vector<256x128xf32>
    %c0_1 = arith.constant 0 : index
    %c0_2 = arith.constant 0 : index
    %1 = vector.load %arg2[%c0_1, %c0_2] : memref<1x128xf32, #tpu.memory_space<vmem>>, vector<1x128xf32>
    %2 = vector.broadcast %1 : vector<1x128xf32> to vector<256x128xf32>
    %3 = arith.mulf %0, %2 : vector<256x128xf32>
    %c0_3 = arith.constant 0 : index
    %c0_4 = arith.constant 0 : index
    %4 = vector.load %arg3[%c0_3, %c0_4] : memref<1x128xf32, #tpu.memory_space<vmem>>, vector<1x128xf32>
    %5 = vector.broadcast %4 : vector<1x128xf32> to vector<256x128xf32>
    %6 = arith.addf %3, %5 : vector<256x128xf32>
    %cst = arith.constant 0.000000e+00 : f32
    %7 = vector.broadcast %cst : f32 to vector<256x128xf32>
    %8 = arith.maximumf %6, %7 : vector<256x128xf32>
    %c0_5 = arith.constant 0 : index
    %c0_6 = arith.constant 0 : index
    %9 = vector.load %arg4[%c0_5, %c0_6] : memref<256x128xf32, #tpu.memory_space<vmem>>, vector<256x128xf32>
    tpu.vector_store %arg4[%c0_5, %c0_6], %8 {strides = array<i32>} : memref<256x128xf32, #tpu.memory_space<vmem>>, vector<256x128xf32>,
    return
  }
  func.func @transform_0(%arg0: i32) -> (i32, i32) {
    %c0_i32 = arith.constant 0 : i32
    %c0_i32_0 = arith.constant 0 : i32
    return %arg0, %c0_i32 : i32, i32
  }
  func.func @transform_1(%arg0: i32) -> (i32, i32) {
    %c0_i32 = arith.constant 0 : i32
    %c0_i32_0 = arith.constant 0 : i32
    %c0_i32_1 = arith.constant 0 : i32
    return %c0_i32, %c0_i32_0 : i32, i32
  }
  func.func @transform_2(%arg0: i32) -> (i32, i32) {
    %c0_i32 = arith.constant 0 : i32
    %c0_i32_0 = arith.constant 0 : i32
    %c0_i32_1 = arith.constant 0 : i32
    return %c0_i32, %c0_i32_0 : i32, i32
  }
  func.func @transform_3(%arg0: i32) -> (i32, i32) {
    %c0_i32 = arith.constant 0 : i32
    %c0_i32_0 = arith.constant 0 : i32
    return %arg0, %c0_i32 : i32, i32
  }
}

</mosaic_0001>

<bundles_post_ra>
// kernel: double_conv_forward.7
= control target key start
LH: loop header
LB: loop body
LE: loop exit
PB: predicated region body
PF: predicated region fallthrough
CT: control target
= control target key end

     0   :  { %s453_s12 = smov 0   ;;  %s612_s0 = inlined_call_operand.vmem [shape: f32[512,128], index: 0, kind: input, shape index: {}]   ;;  %s613_s1 = inlined_call_operand.vmem [shape: f32[1,128], index: 1, kind: input, shape index: {}]   ;;  %s614_s2 = inlined_call_operand.vmem [shape: f32[1,128], index: 2, kind: input, shape index: {}]   ;;  %s615_s3 = inlined_call_operand.vmem [shape: f32[512,128], index: 3, kind: output, shape index: {}]  }
   0x1 LB: > { %s404_s13 = sadd.s32 4294967295, %s431_s12   ;;  %p408_p0 = scmp.ge.s32.totalorder %s431_s12, 1  ;;  %s431_s12 = sphi %s453_s12, %s13_s12  }
   0x2   : > { %p138_p1 = scmp.lt.s32.totalorder %s431_s12, 3 }
   0x4   : > { %p139_p2 = pnand %p408_p0, %p138_p1 }
   0x5   : > { %s409_s14 = sshll.u32 (!%p139_p2), %s404_s13, 5 }
   0x6   : > { %142 = sbr.rel (%p139_p2) target bundleno = 44 (0x2c), region = 32  ;;  %p163_p3 = scmp.lt.s32.totalorder (!%p139_p2), %s409_s14, 63 }
   0xb   : > { %s617_s14 = smov (!%p163_p3, %s409_s14), 63  ;;  %v464_v0 = vld [vmem:[%s613_s1] ss:$0 sm:$0xff] }
   0xc   : > { %s410_s15 = sshll.u32 %s617_s14, 3  ;;  %v474_v1 = vld [vmem:[%s614_s2] ss:$0 sm:$0xff] }
   0xd   : > { %s469_s20 = scalar_lea.vmem %s612_s0, %s410_s15  ;;  %s497_s25 = scalar_lea.vmem %s615_s3, %s410_s15 }
   0xe   : > { %v174_v2 = vld [vmem:[%s469_s20] sm:$0xff]  ;;  %v175_v3 = vld [vmem:[%s469_s20 + $0x8] sm:$0xff]  ;;  %v176_v4 = vld [vmem:[%s469_s20 + $0x10] sm:$0xff] }
   0xf   : > { %v213_v5 = vmul.f32 %v464_v0, %v174_v2  ;;  %v214_v6 = vmul.f32 %v464_v0, %v175_v3  ;;  %v215_v7 = vmul.f32 %v464_v0, %v176_v4  ;;  %v177_v8 = vld [vmem:[%s469_s20 + $0x18] sm:$0xff]  ;;  %v178_v9 = vld [vmem:[%s469_s20 + $0x20] sm:$0xff]  ;;  %v179_v10 = vld [vmem:[%s469_s20 + $0x28] sm:$0xff] }
  0x10   : > { %v216_v11 = vmul.f32 %v464_v0, %v177_v8  ;;  %v217_v12 = vmul.f32 %v464_v0, %v178_v9  ;;  %v218_v13 = vmul.f32 %v464_v0, %v179_v10  ;;  %v180_v14 = vld [vmem:[%s469_s20 + $0x30] sm:$0xff]  ;;  %v181_v15 = vld [vmem:[%s469_s20 + $0x38] sm:$0xff]  ;;  %v182_v24 = vld [vmem:[%s469_s20 + $0x40] sm:$0xff] }
  0x11   : > { %v252_v16 = vadd.f32 %v474_v1, %v213_v5  ;;  %v253_v17 = vadd.f32 %v474_v1, %v214_v6  ;;  %v254_v18 = vadd.f32 %v474_v1, %v215_v7  ;;  %v219_v19 = vmul.f32 %v464_v0, %v180_v14  ;;  %v183_v25 = vld [vmem:[%s469_s20 + $0x48] sm:$0xff]  ;;  %v184_v26 = vld [vmem:[%s469_s20 + $0x50] sm:$0xff]  ;;  %v185_v31 = vld [vmem:[%s469_s20 + $0x58] sm:$0xff] }
  0x12   : > { %v255_v20 = vadd.f32 %v474_v1, %v216_v11  ;;  %v256_v21 = vadd.f32 %v474_v1, %v217_v12  ;;  %v257_v22 = vadd.f32 %v474_v1, %v218_v13  ;;  %v220_v23 = vmul.f32 %v464_v0, %v181_v15  ;;  %v186_v32 = vld [vmem:[%s469_s20 + $0x60] sm:$0xff]  ;;  %v187_v33 = vld [vmem:[%s469_s20 + $0x68] sm:$0xff]  ;;  %v188_v38 = vld [vmem:[%s469_s20 + $0x70] sm:$0xff] }
  0x13   : > { %v284_v27 = vmax.f32 %v252_v16, 0.0  ;;  %v285_v28 = vmax.f32 %v253_v17, 0.0  ;;  %v286_v29 = vmax.f32 %v254_v18, 0.0  ;;  %v258_v30 = vadd.f32 %v474_v1, %v219_v19  ;;  %v189_v43 = vld [vmem:[%s469_s20 + $0x78] sm:$0xff]  ;;  %v190_v56 = vld [vmem:[%s469_s20 + $0x80] sm:$0xff]  ;;  %v191_v57 = vld [vmem:[%s469_s20 + $0x88] sm:$0xff] }
  0x14   : > { %v287_v34 = vmax.f32 %v255_v20, 0.0  ;;  %v288_v35 = vmax.f32 %v256_v21, 0.0  ;;  %v289_v36 = vmax.f32 %v257_v22, 0.0  ;;  %v259_v37 = vadd.f32 %v474_v1, %v220_v23  ;;  %v192_v58 = vld [vmem:[%s469_s20 + $0x90] sm:$0xff]  ;;  %v193_v63 = vld [vmem:[%s469_s20 + $0x98] sm:$0xff]  ;;  %v194_v2 = vld [vmem:[%s469_s20 + $0xa0] sm:$0xff] }
  0x15   : > { %316 = vst [vmem:[%s497_s25] sm:$0xff] %v284_v27  ;;  %317 = vst [vmem:[%s497_s25 + $0x8] sm:$0xff] %v285_v28  ;;  %v290_v39 = vmax.f32 %v258_v30, 0.0  ;;  %v221_v40 = vmul.f32 %v464_v0, %v182_v24  ;;  %v222_v41 = vmul.f32 %v464_v0, %v183_v25  ;;  %v223_v42 = vmul.f32 %v464_v0, %v184_v26  ;;  %v195_v3 = vld [vmem:[%s469_s20 + $0xa8] sm:$0xff]  ;;  %v196_v8 = vld [vmem:[%s469_s20 + $0xb0] sm:$0xff] }
  0x16   : > { %318 = vst [vmem:[%s497_s25 + $0x10] sm:$0xff] %v286_v29  ;;  %319 = vst [vmem:[%s497_s25 + $0x18] sm:$0xff] %v287_v34  ;;  %v291_v44 = vmax.f32 %v259_v37, 0.0  ;;  %v224_v45 = vmul.f32 %v464_v0, %v185_v31  ;;  %v225_v46 = vmul.f32 %v464_v0, %v186_v32  ;;  %v226_v47 = vmul.f32 %v464_v0, %v187_v33  ;;  %v197_v13 = vld [vmem:[%s469_s20 + $0xb8] sm:$0xff]  ;;  %v198_v26 = vld [vmem:[%s469_s20 + $0xc0] sm:$0xff] }
  0x17   : > { %320 = vst [vmem:[%s497_s25 + $0x20] sm:$0xff] %v288_v35  ;;  %321 = vst [vmem:[%s497_s25 + $0x28] sm:$0xff] %v289_v36  ;;  %v260_v48 = vadd.f32 %v474_v1, %v221_v40  ;;  %v261_v49 = vadd.f32 %v474_v1, %v222_v41  ;;  %v262_v50 = vadd.f32 %v474_v1, %v223_v42  ;;  %v199_v27 = vld [vmem:[%s469_s20 + $0xc8] sm:$0xff]  ;;  %v200_v28 = vld [vmem:[%s469_s20 + $0xd0] sm:$0xff] }
  0x18   : > { %322 = vst [vmem:[%s497_s25 + $0x30] sm:$0xff] %v290_v39  ;;  %v227_v51 = vmul.f32 %v464_v0, %v188_v38  ;;  %323 = vst [vmem:[%s497_s25 + $0x38] sm:$0xff] %v291_v44  ;;  %v263_v52 = vadd.f32 %v474_v1, %v224_v45  ;;  %v264_v53 = vadd.f32 %v474_v1, %v225_v46  ;;  %v201_v33 = vld [vmem:[%s469_s20 + $0xd8] sm:$0xff]  ;;  %v202_v34 = vld [vmem:[%s469_s20 + $0xe0] sm:$0xff] }
  0x19   : > { %v265_v54 = vadd.f32 %v474_v1, %v226_v47  ;;  %v228_v55 = vmul.f32 %v464_v0, %v189_v43  ;;  %v292_v59 = vmax.f32 %v260_v48, 0.0  ;;  %v293_v60 = vmax.f32 %v261_v49, 0.0  ;;  %v203_v35 = vld [vmem:[%s469_s20 + $0xe8] sm:$0xff]  ;;  %v204_v40 = vld [vmem:[%s469_s20 + $0xf0] sm:$0xff]  ;;  %v205_v45 = vld [vmem:[%s469_s20 + $0xf8] sm:$0xff] }
  0x1a   : > { %v294_v61 = vmax.f32 %v262_v50, 0.0  ;;  %v266_v62 = vadd.f32 %v474_v1, %v227_v51  ;;  %v295_v4 = vmax.f32 %v263_v52, 0.0  ;;  %v296_v5 = vmax.f32 %v264_v53, 0.0 }
  0x1b   : > { %v297_v6 = vmax.f32 %v265_v54, 0.0  ;;  %v267_v7 = vadd.f32 %v474_v1, %v228_v55  ;;  %324 = vst [vmem:[%s497_s25 + $0x40] sm:$0xff] %v292_v59  ;;  %325 = vst [vmem:[%s497_s25 + $0x48] sm:$0xff] %v293_v60  ;;  %v229_v10 = vmul.f32 %v464_v0, %v190_v56  ;;  %v230_v11 = vmul.f32 %v464_v0, %v191_v57 }
  0x1c   : > { %326 = vst [vmem:[%s497_s25 + $0x50] sm:$0xff] %v294_v61  ;;  %v298_v9 = vmax.f32 %v266_v62, 0.0  ;;  %v231_v12 = vmul.f32 %v464_v0, %v192_v58  ;;  %327 = vst [vmem:[%s497_s25 + $0x58] sm:$0xff] %v295_v4  ;;  %v232_v15 = vmul.f32 %v464_v0, %v193_v63  ;;  %v233_v16 = vmul.f32 %v464_v0, %v194_v2 }
  0x1d   : > { %328 = vst [vmem:[%s497_s25 + $0x60] sm:$0xff] %v296_v5  ;;  %329 = vst [vmem:[%s497_s25 + $0x68] sm:$0xff] %v297_v6  ;;  %v299_v14 = vmax.f32 %v267_v7, 0.0  ;;  %v234_v17 = vmul.f32 %v464_v0, %v195_v3  ;;  %v268_v18 = vadd.f32 %v474_v1, %v229_v10  ;;  %v269_v19 = vadd.f32 %v474_v1, %v230_v11 }
  0x1e   : > { %330 = vst [vmem:[%s497_s25 + $0x70] sm:$0xff] %v298_v9  ;;  %v270_v20 = vadd.f32 %v474_v1, %v231_v12  ;;  %v235_v21 = vmul.f32 %v464_v0, %v196_v8  ;;  %v271_v22 = vadd.f32 %v474_v1, %v232_v15  ;;  %v272_v23 = vadd.f32 %v474_v1, %v233_v16 }
  0x1f   : > { %331 = vst [vmem:[%s497_s25 + $0x78] sm:$0xff] %v299_v14  ;;  %v273_v24 = vadd.f32 %v474_v1, %v234_v17  ;;  %v236_v25 = vmul.f32 %v464_v0, %v197_v13  ;;  %v300_v29 = vmax.f32 %v268_v18, 0.0  ;;  %v301_v30 = vmax.f32 %v269_v19, 0.0 }
  0x20   : > { %v302_v31 = vmax.f32 %v270_v20, 0.0  ;;  %v274_v32 = vadd.f32 %v474_v1, %v235_v21  ;;  %v303_v36 = vmax.f32 %v271_v22, 0.0  ;;  %v304_v37 = vmax.f32 %v272_v23, 0.0 }
  0x21   : > { %v305_v38 = vmax.f32 %v273_v24, 0.0  ;;  %v275_v39 = vadd.f32 %v474_v1, %v236_v25  ;;  %332 = vst [vmem:[%s497_s25 + $0x80] sm:$0xff] %v300_v29  ;;  %333 = vst [vmem:[%s497_s25 + $0x88] sm:$0xff] %v301_v30  ;;  %v237_v42 = vmul.f32 %v464_v0, %v198_v26  ;;  %v238_v43 = vmul.f32 %v464_v0, %v199_v27 }
  0x22   : > { %334 = vst [vmem:[%s497_s25 + $0x90] sm:$0xff] %v302_v31  ;;  %v306_v41 = vmax.f32 %v274_v32, 0.0  ;;  %v239_v44 = vmul.f32 %v464_v0, %v200_v28  ;;  %335 = vst [vmem:[%s497_s25 + $0x98] sm:$0xff] %v303_v36  ;;  %v240_v47 = vmul.f32 %v464_v0, %v201_v33  ;;  %v241_v48 = vmul.f32 %v464_v0, %v202_v34 }
  0x23   : > { %336 = vst [vmem:[%s497_s25 + $0xa0] sm:$0xff] %v304_v37  ;;  %337 = vst [vmem:[%s497_s25 + $0xa8] sm:$0xff] %v305_v38  ;;  %v307_v46 = vmax.f32 %v275_v39, 0.0  ;;  %v242_v49 = vmul.f32 %v464_v0, %v203_v35  ;;  %v276_v50 = vadd.f32 %v474_v1, %v237_v42  ;;  %v277_v51 = vadd.f32 %v474_v1, %v238_v43 }
  0x24   : > { %338 = vst [vmem:[%s497_s25 + $0xb0] sm:$0xff] %v306_v41  ;;  %v278_v52 = vadd.f32 %v474_v1, %v239_v44  ;;  %v243_v53 = vmul.f32 %v464_v0, %v204_v40  ;;  %v279_v54 = vadd.f32 %v474_v1, %v240_v47  ;;  %v280_v55 = vadd.f32 %v474_v1, %v241_v48 }
  0x25   : > { %339 = vst [vmem:[%s497_s25 + $0xb8] sm:$0xff] %v307_v46  ;;  %v281_v56 = vadd.f32 %v474_v1, %v242_v49  ;;  %v244_v57 = vmul.f32 %v464_v0, %v205_v45  ;;  %v308_v58 = vmax.f32 %v276_v50, 0.0  ;;  %v309_v59 = vmax.f32 %v277_v51, 0.0 }
  0x26   : > { %v310_v60 = vmax.f32 %v278_v52, 0.0  ;;  %v282_v61 = vadd.f32 %v474_v1, %v243_v53  ;;  %v311_v62 = vmax.f32 %v279_v54, 0.0  ;;  %v312_v63 = vmax.f32 %v280_v55, 0.0 }
  0x27   : > { %v313_v2 = vmax.f32 %v281_v56, 0.0  ;;  %v283_v3 = vadd.f32 %v474_v1, %v244_v57  ;;  %340 = vst [vmem:[%s497_s25 + $0xc0] sm:$0xff] %v308_v58  ;;  %341 = vst [vmem:[%s497_s25 + $0xc8] sm:$0xff] %v309_v59 }
  0x28   : > { %342 = vst [vmem:[%s497_s25 + $0xd0] sm:$0xff] %v310_v60  ;;  %v314_v4 = vmax.f32 %v282_v61, 0.0  ;;  %343 = vst [vmem:[%s497_s25 + $0xd8] sm:$0xff] %v311_v62 }
  0x29   : > { %344 = vst [vmem:[%s497_s25 + $0xe0] sm:$0xff] %v312_v63  ;;  %345 = vst [vmem:[%s497_s25 + $0xe8] sm:$0xff] %v313_v2  ;;  %v315_v0 = vmax.f32 %v283_v3, 0.0 }
  0x2a   : > { %346 = vst [vmem:[%s497_s25 + $0xf0] sm:$0xff] %v314_v4 }
  0x2b   : > { %347 = vst [vmem:[%s497_s25 + $0xf8] sm:$0xff] %v315_v0 }
  0x2c PF: > { %s13_s12 = sadd.s32 1, %s431_s12  }
  0x2d   : > { %p10_p4 = scmp.ge.s32.totalorder %s13_s12, 4  }
  0x2f   :  { %12 = sbr.rel (!%p10_p4) target bundleno = 1 (0x1), region = 62 }

// kernel: double_conv_forward.5
= control target key start
LH: loop header
LB: loop body
LE: loop exit
PB: predicated region body
PF: predicated region fallthrough
CT: control target
= control target key end

     0   :  { %s740_s12 = smov 0   ;;  %s887_s0 = inlined_call_operand.vmem [shape: f32[512,128], index: 0, kind: input, shape index: {}]   ;;  %s888_s1 = inlined_call_operand.vmem [shape: f32[1,128], index: 1, kind: input, shape index: {}]   ;;  %s889_s2 = inlined_call_operand.vmem [shape: f32[1,128], index: 2, kind: input, shape index: {}]   ;;  %s890_s3 = inlined_call_operand.vmem [shape: bf16[512,128], index: 3, kind: output, shape index: {}]  }
   0x1 LB: > { %s532_s13 = sadd.s32 4294967295, %s718_s12   ;;  %p536_p0 = scmp.ge.s32.totalorder %s718_s12, 1  ;;  %s718_s12 = sphi %s740_s12, %s13_s12  }
   0x2   : > { %p138_p1 = scmp.lt.s32.totalorder %s718_s12, 3 }
   0x4   : > { %p139_p2 = pnand %p536_p0, %p138_p1 }
   0x5   : > { %s537_s14 = sshll.u32 (!%p139_p2), %s532_s13, 5 }
   0x6   : > { %142 = sbr.rel (%p139_p2) target bundleno = 49 (0x31), region = 32  ;;  %p163_p3 = scmp.lt.s32.totalorder (!%p139_p2), %s537_s14, 63 }
   0xb   : > { %s892_s14 = smov (!%p163_p3, %s537_s14), 63  ;;  %v754_v0 = vld [vmem:[%s888_s1] ss:$0 sm:$0xff] }
   0xc   : > { %s538_s15 = sshll.u32 %s892_s14, 3  ;;  %v764_v1 = vld [vmem:[%s889_s2] ss:$0 sm:$0xff]  ;;  %s540_s23 = sshll.u32 %s892_s14, 2 }
   0xd   : > { %s759_s20 = scalar_lea.vmem %s887_s0, %s538_s15  ;;  %s796_s26 = scalar_lea.vmem %s890_s3, %s540_s23 }
   0xe   : > { %v174_v2 = vld [vmem:[%s759_s20] sm:$0xff]  ;;  %v175_v3 = vld [vmem:[%s759_s20 + $0x8] sm:$0xff]  ;;  %v176_v4 = vld [vmem:[%s759_s20 + $0x10] sm:$0xff] }
   0xf   : > { %v213_v5 = vmul.f32 %v754_v0, %v174_v2  ;;  %v214_v6 = vmul.f32 %v754_v0, %v175_v3  ;;  %v177_v7 = vld [vmem:[%s759_s20 + $0x18] sm:$0xff]  ;;  %v215_v8 = vmul.f32 %v754_v0, %v176_v4  ;;  %v178_v9 = vld [vmem:[%s759_s20 + $0x20] sm:$0xff]  ;;  %v179_v10 = vld [vmem:[%s759_s20 + $0x28] sm:$0xff] }
  0x10   : > { %v216_v11 = vmul.f32 %v754_v0, %v177_v7  ;;  %v217_v12 = vmul.f32 %v754_v0, %v178_v9  ;;  %v218_v13 = vmul.f32 %v754_v0, %v179_v10  ;;  %v180_v14 = vld [vmem:[%s759_s20 + $0x30] sm:$0xff]  ;;  %v181_v15 = vld [vmem:[%s759_s20 + $0x38] sm:$0xff]  ;;  %v182_v24 = vld [vmem:[%s759_s20 + $0x40] sm:$0xff] }
  0x11   : > { %v252_v16 = vadd.f32 %v764_v1, %v213_v5  ;;  %v253_v17 = vadd.f32 %v764_v1, %v214_v6  ;;  %v254_v18 = vadd.f32 %v764_v1, %v215_v8  ;;  %v219_v19 = vmul.f32 %v754_v0, %v180_v14  ;;  %v183_v25 = vld [vmem:[%s759_s20 + $0x48] sm:$0xff]  ;;  %v184_v30 = vld [vmem:[%s759_s20 + $0x50] sm:$0xff]  ;;  %v185_v35 = vld [vmem:[%s759_s20 + $0x58] sm:$0xff] }
  0x12   : > { %v255_v20 = vadd.f32 %v764_v1, %v216_v11  ;;  %v256_v21 = vadd.f32 %v764_v1, %v217_v12  ;;  %v257_v22 = vadd.f32 %v764_v1, %v218_v13  ;;  %v220_v23 = vmul.f32 %v754_v0, %v181_v15  ;;  %v186_v36 = vld [vmem:[%s759_s20 + $0x60] sm:$0xff]  ;;  %v187_v41 = vld [vmem:[%s759_s20 + $0x68] sm:$0xff]  ;;  %v188_v42 = vld [vmem:[%s759_s20 + $0x70] sm:$0xff] }
  0x13   : > { %v284_v26 = vmax.f32 %v252_v16, 0.0  ;;  %v285_v27 = vmax.f32 %v253_v17, 0.0  ;;  %v286_v28 = vmax.f32 %v254_v18, 0.0  ;;  %v258_v29 = vadd.f32 %v764_v1, %v219_v19  ;;  %v189_v51 = vld [vmem:[%s759_s20 + $0x78] sm:$0xff]  ;;  %v190_v56 = vld [vmem:[%s759_s20 + $0x80] sm:$0xff]  ;;  %v191_v61 = vld [vmem:[%s759_s20 + $0x88] sm:$0xff] }
  0x14   : > { %v287_v31 = vmax.f32 %v255_v20, 0.0  ;;  %v288_v32 = vmax.f32 %v256_v21, 0.0  ;;  %v289_v33 = vmax.f32 %v257_v22, 0.0  ;;  %v259_v34 = vadd.f32 %v764_v1, %v220_v23  ;;  %v192_v4 = vld [vmem:[%s759_s20 + $0x90] sm:$0xff]  ;;  %v193_v5 = vld [vmem:[%s759_s20 + $0x98] sm:$0xff]  ;;  %v194_v10 = vld [vmem:[%s759_s20 + $0xa0] sm:$0xff] }
  0x15   : > { %v612_v37 = vpack.c.bf16 %v285_v27, %v284_v26  ;;  %v290_v38 = vmax.f32 %v258_v29, 0.0  ;;  %v221_v39 = vmul.f32 %v754_v0, %v182_v24  ;;  %v222_v40 = vmul.f32 %v754_v0, %v183_v25  ;;  %v195_v15 = vld [vmem:[%s759_s20 + $0xa8] sm:$0xff]  ;;  %v196_v20 = vld [vmem:[%s759_s20 + $0xb0] sm:$0xff]  ;;  %v197_v25 = vld [vmem:[%s759_s20 + $0xb8] sm:$0xff] }
  0x16   : > { %v617_v43 = vpack.c.bf16 %v287_v31, %v286_v28  ;;  %v622_v44 = vpack.c.bf16 %v289_v33, %v288_v32  ;;  %v291_v45 = vmax.f32 %v259_v34, 0.0  ;;  %v223_v46 = vmul.f32 %v754_v0, %v184_v30  ;;  %v198_v30 = vld [vmem:[%s759_s20 + $0xc0] sm:$0xff] }
  0x17   : > { %613 = vst [vmem:[%s796_s26] sm:$0xff] %v612_v37   ;;  %v260_v47 = vadd.f32 %v764_v1, %v221_v39  ;;  %v261_v48 = vadd.f32 %v764_v1, %v222_v40  ;;  %v224_v49 = vmul.f32 %v754_v0, %v185_v35  ;;  %v225_v50 = vmul.f32 %v754_v0, %v186_v36  ;;  %v199_v35 = vld [vmem:[%s759_s20 + $0xc8] sm:$0xff]  ;;  %v200_v40 = vld [vmem:[%s759_s20 + $0xd0] sm:$0xff] }
  0x18   : > { %689 = vst [vmem:[%s796_s26 + $0x8] sm:$0xff] %v617_v43   ;;  %690 = vst [vmem:[%s796_s26 + $0x10] sm:$0xff] %v622_v44   ;;  %v627_v52 = vpack.c.bf16 %v291_v45, %v290_v38  ;;  %v262_v53 = vadd.f32 %v764_v1, %v223_v46  ;;  %v226_v54 = vmul.f32 %v754_v0, %v187_v41  ;;  %v201_v41 = vld [vmem:[%s759_s20 + $0xd8] sm:$0xff]  ;;  %v202_v46 = vld [vmem:[%s759_s20 + $0xe0] sm:$0xff] }
  0x19   : > { %v227_v55 = vmul.f32 %v754_v0, %v188_v42  ;;  %v292_v57 = vmax.f32 %v260_v47, 0.0  ;;  %v293_v58 = vmax.f32 %v261_v48, 0.0  ;;  %v263_v59 = vadd.f32 %v764_v1, %v224_v49 }
  0x1a   : > { %v264_v60 = vadd.f32 %v764_v1, %v225_v50  ;;  %691 = vst [vmem:[%s796_s26 + $0x18] sm:$0xff] %v627_v52   ;;  %v294_v62 = vmax.f32 %v262_v53, 0.0  ;;  %v265_v63 = vadd.f32 %v764_v1, %v226_v54  ;;  %v228_v2 = vmul.f32 %v754_v0, %v189_v51  ;;  %v203_v51 = vld [vmem:[%s759_s20 + $0xe8] sm:$0xff] }
  0x1b   : > { %v266_v3 = vadd.f32 %v764_v1, %v227_v55  ;;  %v632_v6 = vpack.c.bf16 %v293_v58, %v292_v57  ;;  %v295_v7 = vmax.f32 %v263_v59, 0.0  ;;  %v229_v9 = vmul.f32 %v754_v0, %v190_v56  ;;  %v204_v56 = vld [vmem:[%s759_s20 + $0xf0] sm:$0xff] }
  0x1c   : > { %v296_v8 = vmax.f32 %v264_v60, 0.0  ;;  %v297_v11 = vmax.f32 %v265_v63, 0.0  ;;  %v267_v12 = vadd.f32 %v764_v1, %v228_v2  ;;  %v230_v14 = vmul.f32 %v754_v0, %v191_v61  ;;  %v205_v61 = vld [vmem:[%s759_s20 + $0xf8] sm:$0xff] }
  0x1d   : > { %v298_v13 = vmax.f32 %v266_v3, 0.0  ;;  %692 = vst [vmem:[%s796_s26 + $0x20] sm:$0xff] %v632_v6   ;;  %v637_v16 = vpack.c.bf16 %v295_v7, %v294_v62  ;;  %v268_v17 = vadd.f32 %v764_v1, %v229_v9  ;;  %v231_v18 = vmul.f32 %v754_v0, %v192_v4 }
  0x1e   : > { %v232_v19 = vmul.f32 %v754_v0, %v193_v5  ;;  %v642_v21 = vpack.c.bf16 %v297_v11, %v296_v8  ;;  %v299_v22 = vmax.f32 %v267_v12, 0.0  ;;  %v269_v23 = vadd.f32 %v764_v1, %v230_v14 }
  0x1f   : > { %v233_v24 = vmul.f32 %v754_v0, %v194_v10  ;;  %693 = vst [vmem:[%s796_s26 + $0x28] sm:$0xff] %v637_v16   ;;  %v300_v26 = vmax.f32 %v268_v17, 0.0  ;;  %v270_v27 = vadd.f32 %v764_v1, %v231_v18  ;;  %v234_v29 = vmul.f32 %v754_v0, %v195_v15 }
  0x20   : > { %v271_v28 = vadd.f32 %v764_v1, %v232_v19  ;;  %694 = vst [vmem:[%s796_s26 + $0x30] sm:$0xff] %v642_v21   ;;  %v647_v31 = vpack.c.bf16 %v299_v22, %v298_v13  ;;  %v301_v32 = vmax.f32 %v269_v23, 0.0  ;;  %v235_v34 = vmul.f32 %v754_v0, %v196_v20 }
  0x21   : > { %v272_v33 = vadd.f32 %v764_v1, %v233_v24  ;;  %v302_v36 = vmax.f32 %v270_v27, 0.0  ;;  %v273_v38 = vadd.f32 %v764_v1, %v234_v29  ;;  %v236_v39 = vmul.f32 %v754_v0, %v197_v25 }
  0x22   : > { %v303_v37 = vmax.f32 %v271_v28, 0.0  ;;  %695 = vst [vmem:[%s796_s26 + $0x38] sm:$0xff] %v647_v31   ;;  %v652_v42 = vpack.c.bf16 %v301_v32, %v300_v26  ;;  %v274_v44 = vadd.f32 %v764_v1, %v235_v34  ;;  %v237_v45 = vmul.f32 %v754_v0, %v198_v30 }
  0x23   : > { %v304_v43 = vmax.f32 %v272_v33, 0.0  ;;  %v305_v48 = vmax.f32 %v273_v38, 0.0  ;;  %v275_v49 = vadd.f32 %v764_v1, %v236_v39  ;;  %v238_v50 = vmul.f32 %v754_v0, %v199_v35 }
  0x24   : > { %v657_v47 = vpack.c.bf16 %v303_v37, %v302_v36  ;;  %696 = vst [vmem:[%s796_s26 + $0x40] sm:$0xff] %v652_v42   ;;  %v306_v52 = vmax.f32 %v274_v44, 0.0  ;;  %v276_v53 = vadd.f32 %v764_v1, %v237_v45  ;;  %v239_v54 = vmul.f32 %v754_v0, %v200_v40 }
  0x25   : > { %v240_v55 = vmul.f32 %v754_v0, %v201_v41  ;;  %v662_v57 = vpack.c.bf16 %v305_v48, %v304_v43  ;;  %v307_v58 = vmax.f32 %v275_v49, 0.0  ;;  %v277_v59 = vadd.f32 %v764_v1, %v238_v50 }
  0x26   : > { %697 = vst [vmem:[%s796_s26 + $0x48] sm:$0xff] %v657_v47   ;;  %v241_v60 = vmul.f32 %v754_v0, %v202_v46  ;;  %v308_v62 = vmax.f32 %v276_v53, 0.0  ;;  %v278_v63 = vadd.f32 %v764_v1, %v239_v54  ;;  %v242_v3 = vmul.f32 %v754_v0, %v203_v51 }
  0x27   : > { %v279_v2 = vadd.f32 %v764_v1, %v240_v55  ;;  %698 = vst [vmem:[%s796_s26 + $0x50] sm:$0xff] %v662_v57   ;;  %v667_v4 = vpack.c.bf16 %v307_v58, %v306_v52  ;;  %v309_v5 = vmax.f32 %v277_v59, 0.0  ;;  %v243_v7 = vmul.f32 %v754_v0, %v204_v56 }
  0x28   : > { %v280_v6 = vadd.f32 %v764_v1, %v241_v60  ;;  %v310_v8 = vmax.f32 %v278_v63, 0.0  ;;  %v281_v10 = vadd.f32 %v764_v1, %v242_v3  ;;  %v244_v11 = vmul.f32 %v754_v0, %v205_v61 }
  0x29   : > { %v311_v9 = vmax.f32 %v279_v2, 0.0  ;;  %699 = vst [vmem:[%s796_s26 + $0x58] sm:$0xff] %v667_v4   ;;  %v672_v12 = vpack.c.bf16 %v309_v5, %v308_v62  ;;  %v282_v14 = vadd.f32 %v764_v1, %v243_v7 }
  0x2a   : > { %v312_v13 = vmax.f32 %v280_v6, 0.0  ;;  %v313_v16 = vmax.f32 %v281_v10, 0.0  ;;  %v283_v17 = vadd.f32 %v764_v1, %v244_v11 }
  0x2b   : > { %v677_v15 = vpack.c.bf16 %v311_v9, %v310_v8  ;;  %700 = vst [vmem:[%s796_s26 + $0x60] sm:$0xff] %v672_v12   ;;  %v314_v18 = vmax.f32 %v282_v14, 0.0 }
  0x2c   : > { %v682_v19 = vpack.c.bf16 %v313_v16, %v312_v13  ;;  %v315_v20 = vmax.f32 %v283_v17, 0.0 }
  0x2d   : > { %701 = vst [vmem:[%s796_s26 + $0x68] sm:$0xff] %v677_v15  }
  0x2e   : > { %702 = vst [vmem:[%s796_s26 + $0x70] sm:$0xff] %v682_v19   ;;  %v687_v21 = vpack.c.bf16 %v315_v20, %v314_v18 }
  0x30   : > { %703 = vst [vmem:[%s796_s26 + $0x78] sm:$0xff] %v687_v21  }
  0x31 PF: > { %s13_s12 = sadd.s32 1, %s718_s12  }
  0x32   : > { %p10_p4 = scmp.ge.s32.totalorder %s13_s12, 4  }
  0x34   :  { %12 = sbr.rel (!%p10_p4) target bundleno = 1 (0x1), region = 62 }

// kernel: double_conv_forward.4
= control target key start
LH: loop header
LB: loop body
LE: loop exit
PB: predicated region body
PF: predicated region fallthrough
CT: control target
= control target key end

     0   :  { %s2386_s21 = smov 0   ;;  %s2388_s22 = smov 0   ;;  %s2811_s0 = inlined_call_operand.vmem [shape: bf16[2,18,18,128], index: 0, kind: input, shape index: {}, may-alias: {0,1,2}]   ;;  %s2812_s1 = inlined_call_operand.vmem [shape: bf16[2,18,18,128], index: 1, kind: input, shape index: {}, may-alias: {0,1,2}]   ;;  %s2813_s2 = inlined_call_operand.vmem [shape: bf16[2,18,18,128], index: 2, kind: input, shape index: {}, may-alias: {0,1,2}]   ;;  %s2814_s3 = inlined_call_operand.vmem [shape: bf16[9,128,128], index: 3, kind: input, shape index: {}]   ;;  %s2815_s4 = inlined_call_operand.vmem [shape: f32[2,16,16,128], index: 4, kind: output, shape index: {0}]   ;;  %s2816_s5 = inlined_call_operand.vmem [shape: f32[2,16,1,128], index: 5, kind: output, shape index: {1}]   ;;  %s2817_s6 = inlined_call_operand.vmem [shape: f32[2,16,1,128], index: 6, kind: output, shape index: {2}]  }
   0x1   :  { %s2390_s23 = smov 0   ;;  %s2392_s24 = smov 0  }
   0x2   :  { %s2394_s25 = smov 0  }
   0x3 LB: > { %s26_s26 = sadd.s32 1, %s2339_s23  ;;  %s29_s27 = sadd.s32 1, %s2343_s24  ;;  %s2347_s25 = sphi %s2394_s25, %s17_s25   ;;  %s2343_s24 = sphi %s2392_s24, %s2821_s24   ;;  %s2339_s23 = sphi %s2390_s23, %s2820_s23   ;;  %s2335_s22 = sphi %s2388_s22, %s2819_s22   ;;  %s2331_s21 = sphi %s2386_s21, %s2818_s21  }
   0x4   : > { %p27_p0 = scmp.ge.s32.totalorder %s26_s26, 16  ;;  %p1707_p1 = scmp.ge.s32.totalorder %s2347_s25, 1 }
   0x5   : > { %p281_p2 = scmp.lt.s32.totalorder %s2347_s25, 33 }
   0x6   : > { %s2823_s26 = smov (%p27_p0, %s26_s26), 0  ;;  %s2825_s27 = smov (!%p27_p0, %s29_s27), %s2343_s24 }
   0x7   : > { %p282_p3 = pnand %p1707_p1, %p281_p2  ;;  %p31_p4 = scmp.ge.s32.totalorder %s2825_s27, 2 }
   0x8   : > { %p353_p5 = scmp.lt.s32.totalorder (!%p282_p3), %s2335_s22, 1  ;;  %p355_p6 = scmp.lt.s32.totalorder (!%p282_p3), %s2331_s21, 17 }
   0x9   : > { %s2827_s27 = smov (%p31_p4, %s2825_s27), 0  ;;  %285 = sbr.rel (%p282_p3) target bundleno = 391 (0x187), region = 36 }
   0xa   : > { %s362_s8 = sadd.s32 (!%p282_p3), 1, %s2331_s21  ;;  %s373_s28 = sadd.s32 (!%p282_p3), 2, %s2331_s21 }
   0xb   : > { %p365_p7 = scmp.lt.s32.totalorder (!%p282_p3), %s362_s8, 17  ;;  %p376_p8 = scmp.lt.s32.totalorder (!%p282_p3), %s373_s28, 17 }
   0xc   : > { %p386_p9 = scmp.lt.s32.totalorder (!%p282_p3), %s2331_s21, 15 }
   0xe   : > { %v2231_v0 = vld [vmem:[%s2814_s3 + $0x78] sm:$0xff]   ;;  %v2349_v1 = vmov 0.0   ;;  %v2233_v3 = vld [vmem:[%s2814_s3 + $0x70] sm:$0xff]   ;;  %vm2350_vm0 = vmmov 0   ;;  %s2829_s22 = smov (!%p353_p5, %s2335_s22), 1  ;;  %v2235_v5 = vld [vmem:[%s2814_s3 + $0x68] sm:$0xff]  }
   0xf   : > { %2005 = vmatprep.subr.bf16.mxu0 %v2349_v1  ;;  %2025 = vmatprep.subr.bf16.mxu1 %v2349_v1  ;;  %v2232_v2 = vld [vmem:[%s2814_s3 + $0x38] sm:$0xff]   ;;  %v2234_v4 = vld [vmem:[%s2814_s3 + $0x30] sm:$0xff]   ;;  %s356_s12 = scalar_select %p355_p6, %s2331_s21, 17  ;;  %v2236_v6 = vld [vmem:[%s2814_s3 + $0x28] sm:$0xff]   ;;  %vm452_vm1 = vsmask.f32 7424 }
  0x10   : > { %2006 = vmatpush3.bf16.msra.mxu0 %v2231_v0  ;;  %2021 = vmatprep.mubr.msk.bf16.mxu0 %vm2350_vm0, %v2349_v1  ;;  %s2450_s15 = smul.u32 54, %s2829_s22  ;;  %v2237_v7 = vld [vmem:[%s2814_s3 + $0x60] sm:$0xff]   ;;  %v2239_v9 = vld [vmem:[%s2814_s3 + $0x58] sm:$0xff]   ;;  %v2241_v13 = vld [vmem:[%s2814_s3 + $0x50] sm:$0xff]   ;;  %s2831_s8 = smov (!%p365_p7, %s362_s8), 17  ;;  %vm662_vm2 = vcmask 1046528  }
  0x11   : > { %2026 = vmatpush3.bf16.msra.mxu1 %v2232_v2  ;;  %2007 = vmatprep.subr.bf16.mxu0 %v2349_v1  ;;  %s2185_s18 = smul.u32 3, %s356_s12  ;;  %v2238_v8 = vld [vmem:[%s2814_s3 + $0x20] sm:$0xff]   ;;  %v2240_v10 = vld [vmem:[%s2814_s3 + $0x18] sm:$0xff]   ;;  %v2242_v14 = vld [vmem:[%s2814_s3 + $0x10] sm:$0xff]   ;;  %s2833_s28 = smov (!%p376_p8, %s373_s28), 17 }
  0x12   : > { %2027 = vmatprep.subr.bf16.mxu1 %v2349_v1  ;;  %2041 = vmatprep.mubr.msk.bf16.mxu1 %vm2350_vm0, %v2349_v1  ;;  %v2243_v16 = vld [vmem:[%s2814_s3 + $0x48] sm:$0xff]   ;;  %s2187_s9 = smul.u32 3, %s2831_s8  ;;  %v2245_v21 = vld [vmem:[%s2814_s3 + $0x40] sm:$0xff]   ;;  %v2249_v26 = vld [vmem:[%s2814_s3 + $0xb8] sm:$0xff]   ;;  %s2835_s21 = smov (!%p386_p9, %s2331_s21), 15 }
  0x13   : > { %s359_s19 = sadd.s32 %s2450_s15, %s2185_s18  ;;  %v2244_v20 = vld [vmem:[%s2814_s3 + $0x8] sm:$0xff]   ;;  %v2246_v22 = vld [vmem:[%s2814_s3] sm:$0xff]   ;;  %v2250_v27 = vld [vmem:[%s2814_s3 + $0xf8] sm:$0xff]   ;;  %s2188_s17 = smul.u32 3, %s2833_s28 }
  0x14   : > { %2008 = vmatpush3.bf16.msra.mxu0 %v2233_v3  ;;  %s1708_s7 = sshll.u32 %s359_s19, 2  ;;  %s369_s14 = sadd.s32 %s2187_s9, %s2450_s15  ;;  %v2251_v28 = vld [vmem:[%s2814_s3 + $0xb0] sm:$0xff]   ;;  %v2253_v30 = vld [vmem:[%s2814_s3 + $0xa8] sm:$0xff]   ;;  %v2255_v32 = vld [vmem:[%s2814_s3 + $0xa0] sm:$0xff]  }
  0x15   : > { %2028 = vmatpush3.bf16.msra.mxu1 %v2234_v4  ;;  %2009 = vmatprep.subr.bf16.mxu0 %v2349_v1  ;;  %s361_s13 = scalar_lea.vmem %s2811_s0, %s1708_s7  ;;  %s1709_s19 = sshll.u32 %s369_s14, 2  ;;  %v2252_v29 = vld [vmem:[%s2814_s3 + $0xf0] sm:$0xff]   ;;  %v2254_v31 = vld [vmem:[%s2814_s3 + $0xe8] sm:$0xff]   ;;  %v2256_v33 = vld [vmem:[%s2814_s3 + $0xe0] sm:$0xff]  }
  0x16   : > { %2029 = vmatprep.subr.bf16.mxu1 %v2349_v1  ;;  %v2478_v11 = vld [vmem:[%s361_s13] sm:$0xff]   ;;  %v2480_v12 = vld [vmem:[%s361_s13 + $0x8] ss:$0 sps:$4 sm:$0x11]   ;;  %s2526_s7 = scalar_lea.vmem %s2812_s1, %s1709_s19  ;;  %v2257_v34 = vld [vmem:[%s2814_s3 + $0x98] sm:$0xff]   ;;  %s380_s28 = sadd.s32 %s2188_s17, %s2450_s15 }
  0x17   : > { %v456_v15 = vshll.u32 %v2478_v11, 16  ;;  %v454_v17 = vshrl.u32 %v2478_v11, 16  ;;  %v461_v19 = vshll.u32 %v2480_v12, 16  ;;  %v2258_v35 = vld [vmem:[%s2814_s3 + $0xd8] sm:$0xff]   ;;  %v2259_v36 = vld [vmem:[%s2814_s3 + $0x90] sm:$0xff]   ;;  %v2261_v38 = vld [vmem:[%s2814_s3 + $0x88] sm:$0xff]  }
  0x18   : > { %2010 = vmatpush3.bf16.msra.mxu0 %v2235_v5  ;;  %v2260_v37 = vld [vmem:[%s2814_s3 + $0xd0] sm:$0xff]   ;;  %v2262_v39 = vld [vmem:[%s2814_s3 + $0xc8] sm:$0xff]   ;;  %v663_v40 = vrot.slane %v2478_v11, 1  ;;  %v2263_v41 = vld [vmem:[%s2814_s3 + $0x80] sm:$0xff]   ;;  %v664_v42 = vrot.slane %v2480_v12, 1  ;;  %s1710_s12 = sshll.u32 %s380_s28, 2 }
  0x19   : > { %2030 = vmatpush3.bf16.msra.mxu1 %v2236_v6  ;;  %2011 = vmatprep.subr.bf16.mxu0 %v2349_v1  ;;  %v458_v18 = vrot.slane %v456_v15, 1  ;;  %v463_v24 = vrot.slane %v461_v19, 1  ;;  %v2264_v43 = vld [vmem:[%s2814_s3 + $0xc0] sm:$0xff]   ;;  %v2265_v44 = vld [vmem:[%s2814_s3 + $0x138] sm:$0xff]   ;;  %v2268_v48 = vld [vmem:[%s2814_s3 + $0x130] sm:$0xff]   ;;  %s2612_s18 = scalar_lea.vmem %s2813_s2, %s1710_s12  ;;  %s1711_s10 = sshll.u32 %s2835_s21, 1 }
  0x1a   : > { %2031 = vmatprep.subr.bf16.mxu1 %v2349_v1  ;;  %v665_v45 = vsel %vm662_vm2, %v663_v40, %v664_v42  ;;  %v2594_v46 = vld [vmem:[%s2526_s7] sm:$0xff]   ;;  %v2267_v47 = vld [vmem:[%s2814_s3 + $0x178] sm:$0xff]   ;;  %v2269_v49 = vld [vmem:[%s2814_s3 + $0x170] sm:$0xff]   ;;  %s1712_s11 = sshll.u32 %s2829_s22, 5  ;;  %s1714_s16 = sshll.u32 %s2829_s22, 4 }
  0x1b   : > { %v459_v23 = vor.u32 %v458_v18, %v454_v17  ;;  %v2270_v50 = vld [vmem:[%s2814_s3 + $0x128] sm:$0xff]   ;;  %v2272_v52 = vld [vmem:[%s2814_s3 + $0x120] sm:$0xff]   ;;  %v2274_v54 = vld [vmem:[%s2814_s3 + $0x118] sm:$0xff]   ;;  %v898_v58 = vshll.u32 %v2594_v46, 16  ;;  %v896_v61 = vshrl.u32 %v2594_v46, 16  ;;  %v1016_v6 = vrot.slane %v2594_v46, 1  ;;  %s390_s12 = sadd.s32 %s1712_s11, %s1711_s10  ;;  %s398_s17 = sadd.s32 %s1714_s16, %s2835_s21 }
  0x1c   : > { %2012 = vmatpush3.bf16.msra.mxu0 %v2237_v7  ;;  %v2271_v51 = vld [vmem:[%s2814_s3 + $0x168] sm:$0xff]   ;;  %v2273_v53 = vld [vmem:[%s2814_s3 + $0x160] sm:$0xff]   ;;  %v2275_v55 = vld [vmem:[%s2814_s3 + $0x158] sm:$0xff]   ;;  %s1713_s15 = sshll.u32 %s390_s12, 3  ;;  %s399_s29 = scalar_lea.vmem %s2816_s5, %s398_s17 }
  0x1d   : > { %2032 = vmatpush3.bf16.msra.mxu1 %v2238_v8  ;;  %2013 = vmatprep.subr.bf16.mxu0 %v2349_v1  ;;  %v464_v25 = vsel %vm452_vm1, %v459_v23, %v463_v24  ;;  %v2276_v56 = vld [vmem:[%s2814_s3 + $0x110] sm:$0xff]   ;;  %v2282_v57 = vld [vmem:[%s2526_s7 + $0x8] ss:$0 sps:$4 sm:$0x11]   ;;  %v900_v62 = vrot.slane %v898_v58, 1  ;;  %v2280_v2 = vld [vmem:[%s2814_s3 + $0x100] sm:$0xff]   ;;  %s392_s8 = scalar_lea.vmem %s2815_s4, %s1713_s15 }
  0x1e   : > { %2033 = vmatprep.subr.bf16.mxu1 %v2349_v1  ;;  %v2277_v59 = vld [vmem:[%s2814_s3 + $0x150] sm:$0xff]   ;;  %v2278_v60 = vld [vmem:[%s2814_s3 + $0x108] sm:$0xff]   ;;  %v903_v63 = vshll.u32 %v2282_v57, 16  ;;  %v2281_v5 = vld [vmem:[%s2814_s3 + $0x140] sm:$0xff]   ;;  %v1017_v7 = vrot.slane %v2282_v57, 1 }
  0x1f   : > { %v2279_v0 = vld [vmem:[%s2814_s3 + $0x148] sm:$0xff]   ;;  %v901_v3 = vor.u32 %v900_v62, %v896_v61  ;;  %v2285_v12 = vld [vmem:[%s2814_s3 + $0x1b0] sm:$0xff]   ;;  %v2290_v17 = vld [vmem:[%s2814_s3 + $0x1e0] sm:$0xff]  }
  0x20   : > { %2014 = vmatpush3.bf16.msra.mxu0 %v2239_v9  ;;  %v905_v4 = vrot.slane %v903_v63, 1  ;;  %v2283_v9 = vld [vmem:[%s2814_s3 + $0x1b8] sm:$0xff]   ;;  %v2288_v15 = vld [vmem:[%s2814_s3 + $0x1e8] sm:$0xff]   ;;  %v2306_v40 = vld [vmem:[%s2814_s3 + $0x210] sm:$0xff]  }
  0x21   : > { %2034 = vmatpush3.bf16.msra.mxu1 %v2240_v10  ;;  %2015 = vmatprep.subr.bf16.mxu0 %v2349_v1  ;;  %v1018_v10 = vsel %vm662_vm2, %v1016_v6, %v1017_v7  ;;  %v2291_v18 = vld [vmem:[%s2814_s3 + $0x198] sm:$0xff]   ;;  %v2301_v23 = vld [vmem:[%s2612_s18 + $0x8] ss:$0 sps:$4 sm:$0x11]   ;;  %v2308_v42 = vld [vmem:[%s2814_s3 + $0x200] sm:$0xff]  }
  0x22   : > { %2035 = vmatprep.subr.bf16.mxu1 %v2349_v1  ;;  %v906_v8 = vsel %vm452_vm1, %v901_v3, %v905_v4  ;;  %v2292_v19 = vld [vmem:[%s2814_s3 + $0x1d8] sm:$0xff]  }
  0x24   : > { %2016 = vmatpush3.bf16.msra.mxu0 %v2241_v13  ;;  %v2286_v13 = vld [vmem:[%s2814_s3 + $0x1f0] sm:$0xff]  }
  0x25   : > { %2036 = vmatpush3.bf16.msra.mxu1 %v2242_v14  ;;  %2017 = vmatprep.subr.bf16.mxu0 %v2349_v1  ;;  %v2287_v14 = vld [vmem:[%s2814_s3 + $0x1a8] sm:$0xff]  }
  0x26   : > { %2037 = vmatprep.subr.bf16.mxu1 %v2349_v1 }
  0x28   : > { %2018 = vmatpush3.bf16.msra.mxu0 %v2243_v16  ;;  %v2289_v16 = vld [vmem:[%s2814_s3 + $0x1a0] sm:$0xff]  }
  0x29   : > { %2038 = vmatpush3.bf16.msra.mxu1 %v2244_v20  ;;  %2019 = vmatprep.subr.bf16.mxu0 %v2349_v1  ;;  %v2299_v20 = vld [vmem:[%s2612_s18] sm:$0xff]   ;;  %s406_s18 = scalar_lea.vmem %s2817_s6, %s398_s17 }
  0x2a   : > { %2039 = vmatprep.subr.bf16.mxu1 %v2349_v1  ;;  %v1251_v24 = vshll.u32 %v2299_v20, 16 }
  0x2c   : > { %2020 = vmatpush3.bf16.msra.mxu0 %v2245_v21  ;;  %v2293_v21 = vld [vmem:[%s2814_s3 + $0x190] sm:$0xff]  }
  0x2d   : > { %2040 = vmatpush3.bf16.msra.mxu1 %v2246_v22  ;;  %2045 = vmatprep.subr.bf16.mxu0 %v2349_v1  ;;  %v2294_v22 = vld [vmem:[%s2814_s3 + $0x1d0] sm:$0xff]  }
  0x2e   : > { %2065 = vmatprep.subr.bf16.mxu1 %v2349_v1 }
  0x2f   : > { %2022 = vmatmul.mubr.bf16.vlgmr.msra.gmra.mxu0 %v464_v25  ;;  %v2295_v25 = vld [vmem:[%s2814_s3 + $0x188] sm:$0xff]  }
  0x30   : > { %2042 = vmatmul.mubr.bf16.vlgmr.msra.gmra.mxu1 %v2478_v11  ;;  %2046 = vmatpush3.bf16.msra.mxu0 %v2249_v26  ;;  %v2284_v11 = vld [vmem:[%s2814_s3 + $0x1f8] sm:$0xff]   ;;  %v2296_v26 = vld [vmem:[%s2814_s3 + $0x1c8] sm:$0xff]  }
  0x31   : > { %2066 = vmatpush3.bf16.msra.mxu1 %v2250_v27  ;;  %2047 = vmatprep.subr.bf16.mxu0 %v2349_v1  ;;  %v1249_v27 = vshrl.u32 %v2299_v20, 16 }
  0x32   : > { %2067 = vmatprep.subr.bf16.mxu1 %v2349_v1  ;;  %2061 = vmatprep.mubr.msk.bf16.mxu0 %vm2350_vm0, %v2349_v1 }
  0x33   : > { %2081 = vmatprep.mubr.msk.bf16.mxu1 %vm2350_vm0, %v2349_v1 }
  0x34   : > { %2048 = vmatpush3.bf16.msra.mxu0 %v2251_v28  ;;  %v1253_v28 = vrot.slane %v1251_v24, 1 }
  0x35   : > { %2068 = vmatpush3.bf16.msra.mxu1 %v2252_v29  ;;  %2049 = vmatprep.subr.bf16.mxu0 %v2349_v1  ;;  %v1256_v29 = vshll.u32 %v2301_v23, 16 }
  0x36   : > { %2069 = vmatprep.subr.bf16.mxu1 %v2349_v1 }
  0x38   : > { %2050 = vmatpush3.bf16.msra.mxu0 %v2253_v30  ;;  %v2297_v30 = vld [vmem:[%s2814_s3 + $0x180] sm:$0xff]  }
  0x39   : > { %2070 = vmatpush3.bf16.msra.mxu1 %v2254_v31  ;;  %2051 = vmatprep.subr.bf16.mxu0 %v2349_v1  ;;  %v2298_v31 = vld [vmem:[%s2814_s3 + $0x1c0] sm:$0xff]  }
  0x3a   : > { %2071 = vmatprep.subr.bf16.mxu1 %v2349_v1 }
  0x3c   : > { %2052 = vmatpush3.bf16.msra.mxu0 %v2255_v32  ;;  %v1254_v32 = vor.u32 %v1253_v28, %v1249_v27 }
  0x3d   : > { %2072 = vmatpush3.bf16.msra.mxu1 %v2256_v33  ;;  %2053 = vmatprep.subr.bf16.mxu0 %v2349_v1  ;;  %v1258_v33 = vrot.slane %v1256_v29, 1 }
  0x3e   : > { %2073 = vmatprep.subr.bf16.mxu1 %v2349_v1 }
  0x40   : > { %2054 = vmatpush3.bf16.msra.mxu0 %v2257_v34  ;;  %v2300_v34 = vld [vmem:[%s2814_s3 + $0x238] sm:$0xff]  }
  0x41   : > { %2074 = vmatpush3.bf16.msra.mxu1 %v2258_v35  ;;  %2055 = vmatprep.subr.bf16.mxu0 %v2349_v1  ;;  %v1259_v35 = vsel %vm452_vm1, %v1254_v32, %v1258_v33 }
  0x42   : > { %2075 = vmatprep.subr.bf16.mxu1 %v2349_v1 }
  0x44   : > { %2056 = vmatpush3.bf16.msra.mxu0 %v2259_v36  ;;  %v2302_v36 = vld [vmem:[%s2814_s3 + $0x230] sm:$0xff]  }
  0x45   : > { %2076 = vmatpush3.bf16.msra.mxu1 %v2260_v37  ;;  %2057 = vmatprep.subr.bf16.mxu0 %v2349_v1  ;;  %v2303_v37 = vld [vmem:[%s2814_s3 + $0x228] sm:$0xff]  }
  0x46   : > { %2077 = vmatprep.subr.bf16.mxu1 %v2349_v1 }
  0x48   : > { %2058 = vmatpush3.bf16.msra.mxu0 %v2261_v38  ;;  %v2304_v38 = vld [vmem:[%s2814_s3 + $0x220] sm:$0xff]  }
  0x49   : > { %2078 = vmatpush3.bf16.msra.mxu1 %v2262_v39  ;;  %2059 = vmatprep.subr.bf16.mxu0 %v2349_v1  ;;  %v2305_v39 = vld [vmem:[%s2814_s3 + $0x218] sm:$0xff]  }
  0x4a   : > { %2079 = vmatprep.subr.bf16.mxu1 %v2349_v1 }
  0x4c   : > { %2060 = vmatpush3.bf16.msra.mxu0 %v2263_v41  ;;  %v2307_v41 = vld [vmem:[%s2814_s3 + $0x208] sm:$0xff]  }
  0x4d   : > { %2080 = vmatpush3.bf16.msra.mxu1 %v2264_v43  ;;  %2085 = vmatprep.subr.bf16.mxu0 %v2349_v1  ;;  %v1369_v43 = vrot.slane %v2299_v20, 1 }
  0x4e   : > { %2105 = vmatprep.subr.bf16.mxu1 %v2349_v1 }
  0x4f   : > { %2062 = vmatmul.mubr.bf16.vlgmr.msra.gmra.mxu0 %v665_v45 }
  0x50   : > { %2086 = vmatpush3.bf16.msra.mxu0 %v2265_v44  ;;  %2082 = vmatmul.mubr.bf16.vlgmr.msra.gmra.mxu1 %v2594_v46  ;;  %v1370_v44 = vrot.slane %v2301_v23, 1 }
  0x51   : > { %2106 = vmatpush3.bf16.msra.mxu1 %v2267_v47  ;;  %2087 = vmatprep.subr.bf16.mxu0 %v2349_v1 }
  0x52   : > { %2107 = vmatprep.subr.bf16.mxu1 %v2349_v1  ;;  %2101 = vmatprep.mubr.msk.bf16.mxu0 %vm2350_vm0, %v2349_v1  ;;  %v1371_v45 = vsel %vm662_vm2, %v1369_v43, %v1370_v44 }
  0x53   : > { %2121 = vmatprep.mubr.msk.bf16.mxu1 %vm2350_vm0, %v2349_v1 }
  0x54   : > { %2088 = vmatpush3.bf16.msra.mxu0 %v2268_v48 }
  0x55   : > { %2108 = vmatpush3.bf16.msra.mxu1 %v2269_v49  ;;  %2089 = vmatprep.subr.bf16.mxu0 %v2349_v1 }
  0x56   : > { %2109 = vmatprep.subr.bf16.mxu1 %v2349_v1 }
  0x58   : > { %2090 = vmatpush3.bf16.msra.mxu0 %v2270_v50 }
  0x59   : > { %2110 = vmatpush3.bf16.msra.mxu1 %v2271_v51  ;;  %2091 = vmatprep.subr.bf16.mxu0 %v2349_v1 }
  0x5a   : > { %2111 = vmatprep.subr.bf16.mxu1 %v2349_v1 }
  0x5c   : > { %2092 = vmatpush3.bf16.msra.mxu0 %v2272_v52 }
  0x5d   : > { %2112 = vmatpush3.bf16.msra.mxu1 %v2273_v53  ;;  %2093 = vmatprep.subr.bf16.mxu0 %v2349_v1 }
  0x5e   : > { %2113 = vmatprep.subr.bf16.mxu1 %v2349_v1 }
  0x60   : > { %2094 = vmatpush3.bf16.msra.mxu0 %v2274_v54 }
  0x61   : > { %2114 = vmatpush3.bf16.msra.mxu1 %v2275_v55  ;;  %2095 = vmatprep.subr.bf16.mxu0 %v2349_v1 }
  0x62   : > { %2115 = vmatprep.subr.bf16.mxu1 %v2349_v1 }
  0x64   : > { %2096 = vmatpush3.bf16.msra.mxu0 %v2276_v56 }
  0x65   : > { %2116 = vmatpush3.bf16.msra.mxu1 %v2277_v59  ;;  %2097 = vmatprep.subr.bf16.mxu0 %v2349_v1 }
  0x66   : > { %2117 = vmatprep.subr.bf16.mxu1 %v2349_v1 }
  0x68   : > { %2098 = vmatpush3.bf16.msra.mxu0 %v2278_v60 }
  0x69   : > { %2118 = vmatpush3.bf16.msra.mxu1 %v2279_v0  ;;  %2099 = vmatprep.subr.bf16.mxu0 %v2349_v1 }
  0x6a   : > { %2119 = vmatprep.subr.bf16.mxu1 %v2349_v1 }
  0x6c   : > { %2100 = vmatpush3.bf16.msra.mxu0 %v2280_v2 }
  0x6d   : > { %2120 = vmatpush3.bf16.msra.mxu1 %v2281_v5  ;;  %2125 = vmatprep.subr.bf16.mxu0 %v2349_v1 }
  0x6e   : > { %2145 = vmatprep.subr.bf16.mxu1 %v2349_v1 }
  0x6f   : > { %2102 = vmatmul.mubr.bf16.vlgmr.msra.gmra.mxu0 %v906_v8 }
  0x70   : > { %2126 = vmatpush3.bf16.msra.mxu0 %v2283_v9  ;;  %2122 = vmatmul.mubr.bf16.vlgmr.msra.gmra.mxu1 %v1018_v10 }
  0x71   : > { %2146 = vmatpush3.bf16.msra.mxu1 %v2284_v11  ;;  %2127 = vmatprep.subr.bf16.mxu0 %v2349_v1 }
  0x72   : > { %2147 = vmatprep.subr.bf16.mxu1 %v2349_v1  ;;  %2141 = vmatprep.mubr.msk.bf16.mxu0 %vm2350_vm0, %v2349_v1 }
  0x73   : > { %2161 = vmatprep.mubr.msk.bf16.mxu1 %vm2350_vm0, %v2349_v1 }
  0x74   : > { %2128 = vmatpush3.bf16.msra.mxu0 %v2285_v12 }
  0x75   : > { %2148 = vmatpush3.bf16.msra.mxu1 %v2286_v13  ;;  %2129 = vmatprep.subr.bf16.mxu0 %v2349_v1 }
  0x76   : > { %2149 = vmatprep.subr.bf16.mxu1 %v2349_v1 }
  0x78   : > { %2130 = vmatpush3.bf16.msra.mxu0 %v2287_v14 }
  0x79   : > { %2150 = vmatpush3.bf16.msra.mxu1 %v2288_v15  ;;  %2131 = vmatprep.subr.bf16.mxu0 %v2349_v1 }
  0x7a   : > { %2151 = vmatprep.subr.bf16.mxu1 %v2349_v1 }
  0x7c   : > { %2132 = vmatpush3.bf16.msra.mxu0 %v2289_v16 }
  0x7d   : > { %2152 = vmatpush3.bf16.msra.mxu1 %v2290_v17  ;;  %2133 = vmatprep.subr.bf16.mxu0 %v2349_v1 }
  0x7e   : > { %2153 = vmatprep.subr.bf16.mxu1 %v2349_v1 }
  0x80   : > { %2134 = vmatpush3.bf16.msra.mxu0 %v2291_v18 }
  0x81   : > { %2154 = vmatpush3.bf16.msra.mxu1 %v2292_v19  ;;  %2135 = vmatprep.subr.bf16.mxu0 %v2349_v1 }
  0x82   : > { %2155 = vmatprep.subr.bf16.mxu1 %v2349_v1 }
  0x84   : > { %2136 = vmatpush3.bf16.msra.mxu0 %v2293_v21 }
  0x85   : > { %2156 = vmatpush3.bf16.msra.mxu1 %v2294_v22  ;;  %2137 = vmatprep.subr.bf16.mxu0 %v2349_v1 }
  0x86   : > { %2157 = vmatprep.subr.bf16.mxu1 %v2349_v1 }
  0x88   : > { %2138 = vmatpush3.bf16.msra.mxu0 %v2295_v25 }
  0x89   : > { %2158 = vmatpush3.bf16.msra.mxu1 %v2296_v26  ;;  %2139 = vmatprep.subr.bf16.mxu0 %v2349_v1 }
  0x8a   : > { %2159 = vmatprep.subr.bf16.mxu1 %v2349_v1 }
  0x8c   : > { %2140 = vmatpush3.bf16.msra.mxu0 %v2297_v30 }
  0x8d   : > { %2160 = vmatpush3.bf16.msra.mxu1 %v2298_v31  ;;  %2165 = vmatprep.subr.bf16.mxu0 %v2349_v1 }
  0x8f   : > { %2142 = vmatmul.mubr.bf16.vlgmr.msra.gmra.mxu0 %v2299_v20 }
  0x90   : > { %2166 = vmatpush3.bf16.msra.mxu0 %v2300_v34  ;;  %2162 = vmatmul.mubr.bf16.vlgmr.msra.gmra.mxu1 %v1259_v35 }
  0x91   : > { %2167 = vmatprep.subr.bf16.mxu0 %v2349_v1  ;;  %2181 = vmatprep.mubr.msk.bf16.mxu0 %vm2350_vm0, %v2349_v1 }
  0x94   : > { %2168 = vmatpush3.bf16.msra.mxu0 %v2302_v36 }
  0x95   : > { %2169 = vmatprep.subr.bf16.mxu0 %v2349_v1 }
  0x98   : > { %2170 = vmatpush3.bf16.msra.mxu0 %v2303_v37 }
  0x99   : > { %2171 = vmatprep.subr.bf16.mxu0 %v2349_v1 }
  0x9c   : > { %2172 = vmatpush3.bf16.msra.mxu0 %v2304_v38 }
  0x9d   : > { %2173 = vmatprep.subr.bf16.mxu0 %v2349_v1 }
  0xa0   : > { %2174 = vmatpush3.bf16.msra.mxu0 %v2305_v39 }
  0xa1   : > { %2175 = vmatprep.subr.bf16.mxu0 %v2349_v1 }
  0xa4   : > { %2176 = vmatpush3.bf16.msra.mxu0 %v2306_v40 }
  0xa5   : > { %2177 = vmatprep.subr.bf16.mxu0 %v2349_v1 }
  0xa8   : > { %2178 = vmatpush3.bf16.msra.mxu0 %v2307_v41 }
  0xa9   : > { %2179 = vmatprep.subr.bf16.mxu0 %v2349_v1 }
  0xac   : > { %2180 = vmatpush3.bf16.msra.mxu0 %v2308_v42 }
  0xaf   : > { %2182 = vmatmul.mubr.bf16.vlgmr.msra.gmra.mxu0 %v1371_v45 }
  0xef   : > { %v548_v46 = vpop.f32.mrf.mxu0 }
  0xf0   : > { %v638_v47 = vpop.f32.mrf.mxu1 }
  0xf1   : > { %v639_v48 = vadd.f32 %v638_v47, %v548_v46  ;;  %v2023_v49 = vpop.f32.mrf.mxu0 }
  0xf2   : > { %v2043_v50 = vpop.f32.mrf.mxu1 }
  0xf3   : > { %v551_v51 = vpop.f32.mrf.mxu0 }
  0xf4   : > { %v641_v52 = vpop.f32.mrf.mxu1 }
  0xf5   : > { %v642_v53 = vadd.f32 %v641_v52, %v551_v51  ;;  %v2024_v54 = vpop.f32.mrf.mxu0 }
  0xf6   : > { %v2044_v55 = vpop.f32.mrf.mxu1 }
 0x10f   : > { %v749_v56 = vpop.f32.mrf.mxu0 }
 0x110   : > { %v756_v57 = vadd.f32 %v749_v56, %v639_v48  ;;  %v866_v58 = vpop.f32.mrf.mxu1 }
 0x111   : > { %v2063_v59 = vpop.f32.mrf.mxu0 }
 0x112   : > { %v873_v60 = vadd.f32 %v866_v58, %v756_v57  ;;  %v2083_v1 = vpop.f32.mrf.mxu1 }
 0x113   : > { %v752_v61 = vpop.f32.mrf.mxu0 }
 0x114   : > { %v757_v62 = vadd.f32 %v752_v61, %v642_v53  ;;  %v869_v63 = vpop.f32.mrf.mxu1 }
 0x115   : > { %v2064_v0 = vpop.f32.mrf.mxu0 }
 0x116   : > { %v874_v2 = vadd.f32 %v869_v63, %v757_v62  ;;  %v2084_v3 = vpop.f32.mrf.mxu1 }
 0x12f   : > { %v990_v4 = vpop.f32.mrf.mxu0 }
 0x130   : > { %v1102_v5 = vpop.f32.mrf.mxu1  ;;  %v997_v20 = vadd.f32 %v990_v4, %v873_v60 }
 0x131   : > { %v2103_v6 = vpop.f32.mrf.mxu0 }
 0x132   : > { %v2123_v7 = vpop.f32.mrf.mxu1  ;;  %v1109_v21 = vadd.f32 %v1102_v5, %v997_v20 }
 0x133   : > { %v993_v8 = vpop.f32.mrf.mxu0 }
 0x134   : > { %v1105_v9 = vpop.f32.mrf.mxu1  ;;  %v998_v22 = vadd.f32 %v993_v8, %v874_v2 }
 0x135   : > { %v2104_v10 = vpop.f32.mrf.mxu0 }
 0x136   : > { %v2124_v11 = vpop.f32.mrf.mxu1  ;;  %v1110_v24 = vadd.f32 %v1105_v9, %v998_v22 }
 0x14f   : > { %v1219_v12 = vpop.f32.mrf.mxu0 }
 0x150   : > { %v1343_v13 = vpop.f32.mrf.mxu1  ;;  %v1226_v23 = vadd.f32 %v1219_v12, %v1109_v21 }
 0x151   : > { %v2143_v14 = vpop.f32.mrf.mxu0 }
 0x152   : > { %v2163_v15 = vpop.f32.mrf.mxu1  ;;  %v1350_v25 = vadd.f32 %v1343_v13, %v1226_v23 }
 0x153   : > { %v1222_v16 = vpop.f32.mrf.mxu0 }
 0x154   : > { %v1346_v17 = vpop.f32.mrf.mxu1  ;;  %v1227_v26 = vadd.f32 %v1222_v16, %v1110_v24 }
 0x155   : > { %v2144_v18 = vpop.f32.mrf.mxu0 }
 0x156   : > { %v2164_v19 = vpop.f32.mrf.mxu1  ;;  %v1351_v30 = vadd.f32 %v1346_v17, %v1227_v26 }
 0x16f   : > { %v1455_v27 = vpop.f32.mrf.mxu0 }
 0x170   : > { %v1462_v28 = vadd.f32 %v1455_v27, %v1350_v25 }
 0x171   : > { %v2183_v29 = vpop.f32.mrf.mxu0 }
 0x172   : > { %1464 = vst [vmem:[%s392_s8] sm:$0xff] %v1462_v28  ;;  %v1474_v34 = vmul.f32 %v1462_v28, %v1462_v28 }
 0x173   : > { %v1458_v31 = vpop.f32.mrf.mxu0 }
 0x174   : > { %v1463_v32 = vadd.f32 %v1458_v31, %v1351_v30 }
 0x175   : > { %v2184_v33 = vpop.f32.mrf.mxu0 }
 0x176   : > { %1465 = vst [vmem:[%s392_s8 + $0x8] sm:$0xff] %v1463_v32  ;;  %v1466_v35 = vadd.f32 %v1463_v32, %v1462_v28  ;;  %v1475_v36 = vmul.f32 %v1463_v32, %v1463_v32 }
 0x178   : > { %v1467_v37 = vrot.slane %v1466_v35, 4  ;;  %v1476_v38 = vadd.f32 %v1475_v36, %v1474_v34 }
 0x17a   : > { %v1468_v39 = vadd.f32 %v1467_v37, %v1466_v35  ;;  %v1477_v40 = vrot.slane %v1476_v38, 4 }
 0x17c   : > { %v1469_v41 = vrot.slane %v1468_v39, 2  ;;  %v1478_v42 = vadd.f32 %v1477_v40, %v1476_v38 }
 0x17e   : > { %v1470_v43 = vadd.f32 %v1469_v41, %v1468_v39  ;;  %v1479_v44 = vrot.slane %v1478_v42, 2 }
 0x180   : > { %v1471_v45 = vrot.slane %v1470_v43, 1  ;;  %v1480_v46 = vadd.f32 %v1479_v44, %v1478_v42 }
 0x182   : > { %v1472_v47 = vadd.f32 %v1471_v45, %v1470_v43  ;;  %v1481_v48 = vrot.slane %v1480_v46, 1 }
 0x184   : > { %1473 = vst [vmem:[%s399_s29] sm:$0x1] %v1472_v47  ;;  %v1482_v49 = vadd.f32 %v1481_v48, %v1480_v46 }
 0x186   : > { %1483 = vst [vmem:[%s406_s18] sm:$0x1] %v1482_v49 }
 0x187 PF: > { %s17_s25 = sadd.s32 1, %s2347_s25   ;;  %s2818_s21 = smov %s2339_s23 }
 0x188   : > { %p14_p10 = scmp.ge.s32.totalorder %s17_s25, 34   ;;  %s2819_s22 = smov %s2343_s24 }
 0x189   : > { %s2820_s23 = smov %s2823_s26  ;;  %s2821_s24 = smov %s2827_s27 }
 0x18a   :  { %16 = sbr.rel (!%p14_p10) target bundleno = 3 (0x3), region = 104 }

</bundles_post_ra>
